<compile_context>
chip_gen: v7x
topology: tpu7x:2x2x1
jax: 0.10.0
libtpu: 0.0.40
codegen_flags: <defaults>
</compile_context>

<pallas_src>
import jax
import jax.numpy as jnp
from jax.experimental import pallas as pl
from jax.experimental.pallas import tpu as pltpu

# ----------------------------- configuration -----------------------------
BATCH = 2          # number of input "sentences"
SEQ = 8            # padded sequence length (tokenizer max_length analogue)
ROWS = BATCH * SEQ
HIDDEN = 32        # roberta hidden_size analogue (768 in the real model)
FFN = 64           # intermediate size analogue
EMB_DIM = 16       # MuLAN projection embedding_dim analogue (512 real)
HP = 128           # lane-padded hidden width
FP = 128           # lane-padded FFN width
EMB_PAD = 128      # lane-dense output slab width
VOCAB = 64         # vocab size analogue
N_LAYERS = 2       # encoder depth analogue (12 in roberta-base)
LN_EPS = 1e-5


# --------------------------- in-kernel helpers ----------------------------
def _erf(x):
    # Abramowitz & Stegun 7.1.26, |err| <= 1.5e-7 (matches exact erf-GELU of
    # HF RoBERTa to f32 noise).  The divide is an EUP approximate reciprocal.
    a1, a2, a3, a4, a5 = (0.254829592, -0.284496736, 1.421413741,
                          -1.453152027, 1.061405429)
    p = 0.3275911
    ax = jnp.abs(x)
    t = pl.reciprocal(1.0 + p * ax, approx=True)
    poly = ((((a5 * t + a4) * t + a3) * t + a2) * t + a1) * t
    y = 1.0 - poly * jnp.exp(-ax * ax)
    return jnp.where(x >= 0, y, -y)


def _gelu_exact(x):
    return x * 0.5 * (1.0 + _erf(x * 0.7071067811865476))


def _layernorm(x, g, b, mask):
    # LayerNorm statistics over the real HIDDEN lanes only; padded lanes
    # carry zeros throughout the kernel (b is zero-padded) so the output
    # keeps the zero-padding invariant.
    mu = jnp.sum(x, axis=-1, keepdims=True) * (1.0 / HIDDEN)
    diff = jnp.where(mask, x - mu, 0.0)
    var = jnp.sum(diff * diff, axis=-1, keepdims=True) * (1.0 / HIDDEN)
    return diff * jax.lax.rsqrt(var + LN_EPS) * g + b


# ------------------------------ fused kernel ------------------------------
def encoder_layer_kernel(x_ref, wqkv_ref, bqkv_ref, wo_ref, bo_ref,
                         g1_ref, be1_ref, w1_ref, b1_ref,
                         w2_ref, b2_ref, g2_ref, be2_ref,
                         wp_ref, bp_ref, o_ref, act_ref):
    """One encoder layer per grid step; activations stay resident in VMEM
    scratch (act_ref) across steps; last step does CLS pooling + projection
    and one lane-dense full-tile store to o_ref."""
    l = pl.program_id(0)

    @pl.when(l == 0)
    def _():
        act_ref[...] = x_ref[...]

    x = act_ref[...]                                            # (ROWS, HP) f32
    lane = jax.lax.broadcasted_iota(jnp.int32, (ROWS, HP), 1)
    h_mask = lane < HIDDEN

    # --- fused Q|K|V projection: one MXU matmul (bf16 in, f32 accum) ---
    qkv = (jnp.dot(x.astype(jnp.bfloat16), wqkv_ref[...],
                   preferred_element_type=jnp.float32)
           + bqkv_ref[...])                                     # (ROWS, 3*HP)
    q = qkv[:, 0 * HP:1 * HP]        # 1/sqrt(HIDDEN) pre-folded into Wq/bq
    k = qkv[:, 1 * HP:2 * HP]        # each slice is lane-group aligned
    v = qkv[:, 2 * HP:3 * HP]

    # --- batched single-head self-attention (no per-batch python loop) ---
    qb = q.reshape(BATCH, SEQ, HP)
    kb = k.reshape(BATCH, SEQ, HP)
    vb = v.reshape(BATCH, SEQ, HP)
    scores = jnp.einsum('bqd,bkd->bqk', qb, kb,
                        preferred_element_type=jnp.float32)     # (B, S, S)
    scores = scores - jnp.max(scores, axis=-1, keepdims=True)
    p = jnp.exp(scores)
    p = p * pl.reciprocal(jnp.sum(p, axis=-1, keepdims=True), approx=True)
    attn = jnp.einsum('bqk,bkd->bqd', p, vb,
                      preferred_element_type=jnp.float32)       # (B, S, HP)
    attn = attn.reshape(ROWS, HP)
    attn = (jnp.dot(attn.astype(jnp.bfloat16), wo_ref[...],
                    preferred_element_type=jnp.float32) + bo_ref[...])

    # --- residual + LN1 ---
    h = _layernorm(x + attn, g1_ref[...], be1_ref[...], h_mask)

    # --- feed-forward (exact erf-GELU) ---
    ff = (jnp.dot(h.astype(jnp.bfloat16), w1_ref[...],
                  preferred_element_type=jnp.float32) + b1_ref[...])
    ff = _gelu_exact(ff)
    ff = (jnp.dot(ff.astype(jnp.bfloat16), w2_ref[...],
                  preferred_element_type=jnp.float32) + b2_ref[...])

    # --- residual + LN2; keep activations resident for the next layer ---
    x_new = _layernorm(h + ff, g2_ref[...], be2_ref[...], h_mask)
    act_ref[...] = x_new

    # --- last layer: pool CLS rows first, then project, one dense store ---
    @pl.when(l == pl.num_programs(0) - 1)
    def _():
        cls = x_new.reshape(BATCH, SEQ, HP)[:, 0, :]            # (B, HP)
        o_ref[...] = (jnp.dot(cls.astype(jnp.bfloat16), wp_ref[...],
                              preferred_element_type=jnp.float32)
                      + bp_ref[...])


# ------------------------------ wrapper -----------------------------------
def run_fused_encoder(x_flat, packed):
    """x_flat: (ROWS, HP) f32; packed: dict of stacked/padded weights."""
    grid_spec = pltpu.PrefetchScalarGridSpec(
        num_scalar_prefetch=0,
        grid=(N_LAYERS,),
        in_specs=[
            pl.BlockSpec((ROWS, HP), lambda l: (0, 0)),              # x
            pl.BlockSpec((None, HP, 3 * HP), lambda l: (l, 0, 0)),   # wqkv
            pl.BlockSpec((None, 1, 3 * HP), lambda l: (l, 0, 0)),    # bqkv
            pl.BlockSpec((None, HP, HP), lambda l: (l, 0, 0)),       # wo
            pl.BlockSpec((None, 1, HP), lambda l: (l, 0, 0)),        # bo
            pl.BlockSpec((None, 1, HP), lambda l: (l, 0, 0)),        # g1
            pl.BlockSpec((None, 1, HP), lambda l: (l, 0, 0)),        # be1
            pl.BlockSpec((None, HP, FP), lambda l: (l, 0, 0)),       # w1
            pl.BlockSpec((None, 1, FP), lambda l: (l, 0, 0)),        # b1
            pl.BlockSpec((None, FP, HP), lambda l: (l, 0, 0)),       # w2
            pl.BlockSpec((None, 1, HP), lambda l: (l, 0, 0)),        # b2
            pl.BlockSpec((None, 1, HP), lambda l: (l, 0, 0)),        # g2
            pl.BlockSpec((None, 1, HP), lambda l: (l, 0, 0)),        # be2
            pl.BlockSpec((HP, EMB_PAD), lambda l: (0, 0)),           # w_proj
            pl.BlockSpec((1, EMB_PAD), lambda l: (0, 0)),            # b_proj
        ],
        out_specs=pl.BlockSpec((BATCH, EMB_PAD), lambda l: (0, 0)),
        scratch_shapes=[pltpu.VMEM((ROWS, HP), jnp.float32)],
    )
    return pl.pallas_call(
        encoder_layer_kernel,
        out_shape=jax.ShapeDtypeStruct((BATCH, EMB_PAD), jnp.float32),
        grid_spec=grid_spec,
        compiler_params=pltpu.CompilerParams(
            dimension_semantics=("arbitrary",),        # layer-carried state
            vmem_limit_bytes=64 * 1024 * 1024),
    )(x_flat,
      packed["wqkv"], packed["bqkv"], packed["wo"], packed["bo"],
      packed["g1"], packed["be1"], packed["w1"], packed["b1"],
      packed["w2"], packed["b2"], packed["g2"], packed["be2"],
      packed["w_proj"], packed["b_proj"])


# ------------------------- parameter construction -------------------------
def make_params(key):
    keys = iter(jax.random.split(key, 64))

    def dense(shape, scale=0.02):
        return (scale * jax.random.normal(next(keys), shape)).astype(jnp.float32)

    params = {
        "tok_emb": dense((VOCAB, HIDDEN)),
        "pos_emb": dense((SEQ, HIDDEN)),
        "layers": [],
        "w_proj": dense((HIDDEN, EMB_DIM)),
        "b_proj": jnp.zeros((1, EMB_DIM), jnp.float32),
    }
    for _ in range(N_LAYERS):
        layer = {
            "wq": dense((HIDDEN, HIDDEN)), "bq": jnp.zeros((1, HIDDEN), jnp.float32),
            "wk": dense((HIDDEN, HIDDEN)), "bk": jnp.zeros((1, HIDDEN), jnp.float32),
            "wv": dense((HIDDEN, HIDDEN)), "bv": jnp.zeros((1, HIDDEN), jnp.float32),
            "wo": dense((HIDDEN, HIDDEN)), "bo": jnp.zeros((1, HIDDEN), jnp.float32),
            "g1": jnp.ones((1, HIDDEN), jnp.float32),
            "be1": jnp.zeros((1, HIDDEN), jnp.float32),
            "w1": dense((HIDDEN, FFN)), "b1": jnp.zeros((1, FFN), jnp.float32),
            "w2": dense((FFN, HIDDEN)), "b2": jnp.zeros((1, HIDDEN), jnp.float32),
            "g2": jnp.ones((1, HIDDEN), jnp.float32),
            "be2": jnp.zeros((1, HIDDEN), jnp.float32),
        }
        params["layers"].append(layer)
    return params


def _pad2(a, rows, cols):
    return jnp.pad(a, ((0, rows - a.shape[0]), (0, cols - a.shape[1])))


def pack_params(params):
    """Stack per-layer weights, fuse Q|K|V with each segment in its own
    128-lane slot, fold 1/sqrt(HIDDEN) into Wq/bq, zero-pad every hidden/ffn
    dim to 128 lanes, and cast matmul weights to bf16 (biases/LN stay f32)."""
    scale = 1.0 / float(HIDDEN) ** 0.5
    wqkv = jnp.zeros((N_LAYERS, HP, 3 * HP), jnp.float32)
    bqkv = jnp.zeros((N_LAYERS, 1, 3 * HP), jnp.float32)
    names = ("wo", "bo", "g1", "be1", "w1", "b1", "w2", "b2", "g2", "be2")
    stacks = {n: [] for n in names}
    for i, lyr in enumerate(params["layers"]):
        wqkv = wqkv.at[i, :HIDDEN, 0:HIDDEN].set(lyr["wq"] * scale)
        wqkv = wqkv.at[i, :HIDDEN, HP:HP + HIDDEN].set(lyr["wk"])
        wqkv = wqkv.at[i, :HIDDEN, 2 * HP:2 * HP + HIDDEN].set(lyr["wv"])
        bqkv = bqkv.at[i, :, 0:HIDDEN].set(lyr["bq"] * scale)
        bqkv = bqkv.at[i, :, HP:HP + HIDDEN].set(lyr["bk"])
        bqkv = bqkv.at[i, :, 2 * HP:2 * HP + HIDDEN].set(lyr["bv"])
        stacks["wo"].append(_pad2(lyr["wo"], HP, HP))
        stacks["bo"].append(_pad2(lyr["bo"], 1, HP))
        stacks["g1"].append(_pad2(lyr["g1"], 1, HP))
        stacks["be1"].append(_pad2(lyr["be1"], 1, HP))
        stacks["w1"].append(_pad2(lyr["w1"], HP, FP))
        stacks["b1"].append(_pad2(lyr["b1"], 1, FP))
        stacks["w2"].append(_pad2(lyr["w2"], FP, HP))
        stacks["b2"].append(_pad2(lyr["b2"], 1, HP))
        stacks["g2"].append(_pad2(lyr["g2"], 1, HP))
        stacks["be2"].append(_pad2(lyr["be2"], 1, HP))
    packed = {n: jnp.stack(v) for n, v in stacks.items()}
    packed["wqkv"] = wqkv
    packed["bqkv"] = bqkv
    packed["w_proj"] = _pad2(params["w_proj"], HP, EMB_PAD)
    packed["b_proj"] = _pad2(params["b_proj"], 1, EMB_PAD)
    for n in ("wqkv", "wo", "w1", "w2", "w_proj"):      # MXU operands -> bf16
        packed[n] = packed[n].astype(jnp.bfloat16)
    return packed


# ------------------------------- forward ----------------------------------
@jax.jit
def mulan_text_encoder_forward(token_ids, tok_emb, pos_emb, packed):
    """token_ids: (B, S) int32.  Returns projected embedding (B, EMB_DIM)."""
    # Embedding lookup + positional embeddings (glue, plain JAX gather),
    # then lane-pad hidden to 128 so every in-kernel tile is vreg-dense.
    x = tok_emb[token_ids] + pos_emb[None, :, :]             # (B, S, HIDDEN)
    x = jnp.pad(x, ((0, 0), (0, 0), (0, HP - HIDDEN)))
    x_flat = x.reshape(ROWS, HP).astype(jnp.float32)

    out_pad = run_fused_encoder(x_flat, packed)              # (B, EMB_PAD)
    return out_pad[:, :EMB_DIM]


if __name__ == "__main__":
    key = jax.random.PRNGKey(0)
    k_ids, k_params = jax.random.split(key)

    # Deterministic stand-in for tokenizer output (token id 0 = <s> / CLS).
    token_ids = jax.random.randint(k_ids, (BATCH, SEQ), 1, VOCAB,
                                   dtype=jnp.int32)
    token_ids = token_ids.at[:, 0].set(0)

    params = make_params(k_params)
    packed = pack_params(params)

    out = mulan_text_encoder_forward(token_ids, params["tok_emb"],
                                     params["pos_emb"], packed)
    out = jax.block_until_ready(out)

    assert out.shape == (BATCH, EMB_DIM), out.shape
    assert out.dtype == jnp.float32
    assert bool(jnp.all(jnp.isfinite(out)))
    print("KERNEL_OK")
</pallas_src>

<mosaic_0001>
module attributes {stable_mosaic.version = 11 : i64} {
  func.func @encoder_layer_kernel(%arg0: i32, %arg1: memref<16x128xf32, #tpu.memory_space<vmem>>, %arg2: memref<1x128x384xbf16, #tpu.memory_space<vmem>>, %arg3: memref<1x1x384xf32, #tpu.memory_space<vmem>>, %arg4: memref<1x128x128xbf16, #tpu.memory_space<vmem>>, %arg5: memref<1x1x128xf32, #tpu.memory_space<vmem>>, %arg6: memref<1x1x128xf32, #tpu.memory_space<vmem>>, %arg7: memref<1x1x128xf32, #tpu.memory_space<vmem>>, %arg8: memref<1x128x128xbf16, #tpu.memory_space<vmem>>, %arg9: memref<1x1x128xf32, #tpu.memory_space<vmem>>, %arg10: memref<1x128x128xbf16, #tpu.memory_space<vmem>>, %arg11: memref<1x1x128xf32, #tpu.memory_space<vmem>>, %arg12: memref<1x1x128xf32, #tpu.memory_space<vmem>>, %arg13: memref<1x1x128xf32, #tpu.memory_space<vmem>>, %arg14: memref<128x128xbf16, #tpu.memory_space<vmem>>, %arg15: memref<1x128xf32, #tpu.memory_space<vmem>>, %arg16: memref<2x128xf32, #tpu.memory_space<vmem>>, %arg17: memref<16x128xf32, #tpu.memory_space<vmem>>) attributes {dimension_semantics = [#tpu.dimension_semantics<arbitrary>], iteration_bounds = array<i64: 2>, scalar_prefetch = 0 : i64, scratch_operands = 1 : i64, tpu.core_type = #tpu.core_type<tc>, window_params = [{pipeline_mode = #tpu.pipeline_mode<synchronous>, transform_indices = @transform_0, window_bounds = array<i64: 16, 128>}, {transform_indices = @transform_1, window_bounds = array<i64: 1, 128, 384>}, {transform_indices = @transform_2, window_bounds = array<i64: 1, 1, 384>}, {transform_indices = @transform_3, window_bounds = array<i64: 1, 128, 128>}, {transform_indices = @transform_4, window_bounds = array<i64: 1, 1, 128>}, {transform_indices = @transform_5, window_bounds = array<i64: 1, 1, 128>}, {transform_indices = @transform_6, window_bounds = array<i64: 1, 1, 128>}, {transform_indices = @transform_7, window_bounds = array<i64: 1, 128, 128>}, {transform_indices = @transform_8, window_bounds = array<i64: 1, 1, 128>}, {transform_indices = @transform_9, window_bounds = array<i64: 1, 128, 128>}, {transform_indices = @transform_10, window_bounds = array<i64: 1, 1, 128>}, {transform_indices = @transform_11, window_bounds = array<i64: 1, 1, 128>}, {transform_indices = @transform_12, window_bounds = array<i64: 1, 1, 128>}, {pipeline_mode = #tpu.pipeline_mode<synchronous>, transform_indices = @transform_13, window_bounds = array<i64: 128, 128>}, {pipeline_mode = #tpu.pipeline_mode<synchronous>, transform_indices = @transform_14, window_bounds = array<i64: 1, 128>}, {pipeline_mode = #tpu.pipeline_mode<synchronous>, transform_indices = @transform_15, window_bounds = array<i64: 2, 128>}]} {
    %c0_i32 = arith.constant 0 : i32
    %0 = arith.cmpi eq, %arg0, %c0_i32 : i32
    %1 = arith.extui %0 : i1 to i32
    %c0_i32_0 = arith.constant 0 : i32
    %2 = arith.cmpi ne, %1, %c0_i32_0 : i32
    scf.if %2 {
      %c0_74 = arith.constant 0 : index
      %c0_75 = arith.constant 0 : index
      %155 = vector.load %arg1[%c0_74, %c0_75] : memref<16x128xf32, #tpu.memory_space<vmem>>, vector<16x128xf32>
      %c0_76 = arith.constant 0 : index
      %c0_77 = arith.constant 0 : index
      %156 = vector.load %arg17[%c0_76, %c0_77] : memref<16x128xf32, #tpu.memory_space<vmem>>, vector<16x128xf32>
      tpu.vector_store %arg17[%c0_76, %c0_77], %155 {strides = array<i32>} : memref<16x128xf32, #tpu.memory_space<vmem>>, vector<16x128xf32>,
    } else {
    }
    %c0 = arith.constant 0 : index
    %c0_1 = arith.constant 0 : index
    %3 = vector.load %arg17[%c0, %c0_1] : memref<16x128xf32, #tpu.memory_space<vmem>>, vector<16x128xf32>
    %4 = tpu.iota {dimensions = array<i32: 1>} : vector<16x128xi32>
    %c32_i32 = arith.constant 32 : i32
    %5 = vector.broadcast %c32_i32 : i32 to vector<16x128xi32>
    %6 = arith.cmpi slt, %4, %5 : vector<16x128xi32>
    %7 = arith.truncf %3 : vector<16x128xf32> to vector<16x128xbf16>
    %c0_2 = arith.constant 0 : index
    %c0_3 = arith.constant 0 : index
    %c0_4 = arith.constant 0 : index
    %8 = vector.load %arg2[%c0_2, %c0_3, %c0_4] : memref<1x128x384xbf16, #tpu.memory_space<vmem>>, vector<1x128x384xbf16>
    %9 = vector.shape_cast %8 : vector<1x128x384xbf16> to vector<128x384xbf16>
    %cst = arith.constant dense<0.000000e+00> : vector<16x384xf32>
    %10 = tpu.matmul %7, %9, %cst {dimension_numbers = #tpu.dot_dimension_numbers<[1], [0], [0], [1], [0, 0, 1, 1], [], []>} : vector<16x128xbf16>, vector<128x384xbf16>, vector<16x384xf32> -> vector<16x384xf32>
    %c0_5 = arith.constant 0 : index
    %c0_6 = arith.constant 0 : index
    %c0_7 = arith.constant 0 : index
    %11 = vector.load %arg3[%c0_5, %c0_6, %c0_7] : memref<1x1x384xf32, #tpu.memory_space<vmem>>, vector<1x1x384xf32>
    %12 = vector.shape_cast %11 : vector<1x1x384xf32> to vector<1x384xf32>
    %13 = vector.broadcast %12 : vector<1x384xf32> to vector<16x384xf32>
    %14 = arith.addf %10, %13 : vector<16x384xf32>
    %15 = vector.extract_strided_slice %14 {offsets = [0, 0], sizes = [16, 128], strides = [1, 1]} : vector<16x384xf32> to vector<16x128xf32>
    %16 = vector.extract_strided_slice %14 {offsets = [0, 128], sizes = [16, 128], strides = [1, 1]} : vector<16x384xf32> to vector<16x128xf32>
    %17 = vector.extract_strided_slice %14 {offsets = [0, 256], sizes = [16, 128], strides = [1, 1]} : vector<16x384xf32> to vector<16x128xf32>
    %18 = vector.shape_cast %15 : vector<16x128xf32> to vector<2x8x128xf32>
    %19 = vector.shape_cast %16 : vector<16x128xf32> to vector<2x8x128xf32>
    %20 = vector.shape_cast %17 : vector<16x128xf32> to vector<2x8x128xf32>
    "tpu.trace_start"() <{level = 10 : i32, message = "bqd,bkd->bqk"}> : () -> ()
    %cst_8 = arith.constant dense<0.000000e+00> : vector<2x8x8xf32>
    %21 = tpu.matmul %18, %19, %cst_8 {dimension_numbers = #tpu.dot_dimension_numbers<[2], [2], [1], [1], [0, 0, 0, 1, 1, 1], [0], [0]>} : vector<2x8x128xf32>, vector<2x8x128xf32>, vector<2x8x8xf32> -> vector<2x8x8xf32>
    "tpu.trace_stop"() : () -> ()
    %cst_9 = arith.constant dense<0xFF800000> : vector<2x8xf32>
    %22 = vector.multi_reduction <maximumf>, %21, %cst_9 [2] : vector<2x8x8xf32> to vector<2x8xf32>
    %23 = vector.shape_cast %22 : vector<2x8xf32> to vector<2x8x1xf32>
    %24 = vector.broadcast %23 : vector<2x8x1xf32> to vector<2x8x8xf32>
    %25 = arith.subf %21, %24 : vector<2x8x8xf32>
    %26 = math.exp %25 : vector<2x8x8xf32>
    %cst_10 = arith.constant dense<0.000000e+00> : vector<2x8xf32>
    %27 = vector.multi_reduction <add>, %26, %cst_10 [2] : vector<2x8x8xf32> to vector<2x8xf32>
    %28 = vector.shape_cast %27 : vector<2x8xf32> to vector<2x8x1xf32>
    %29 = tpu.reciprocal %28 {approx = true} : vector<2x8x1xf32> -> vector<2x8x1xf32>
    %30 = vector.broadcast %29 : vector<2x8x1xf32> to vector<2x8x8xf32>
    %31 = arith.mulf %26, %30 : vector<2x8x8xf32>
    "tpu.trace_start"() <{level = 10 : i32, message = "bqk,bkd->bqd"}> : () -> ()
    %cst_11 = arith.constant dense<0.000000e+00> : vector<2x8x128xf32>
    %32 = tpu.matmul %31, %20, %cst_11 {dimension_numbers = #tpu.dot_dimension_numbers<[2], [1], [1], [2], [0, 0, 0, 1, 1, 2], [0], [0]>} : vector<2x8x8xf32>, vector<2x8x128xf32>, vector<2x8x128xf32> -> vector<2x8x128xf32>
    "tpu.trace_stop"() : () -> ()
    %33 = vector.shape_cast %32 : vector<2x8x128xf32> to vector<16x128xf32>
    %34 = arith.truncf %33 : vector<16x128xf32> to vector<16x128xbf16>
    %c0_12 = arith.constant 0 : index
    %c0_13 = arith.constant 0 : index
    %c0_14 = arith.constant 0 : index
    %35 = vector.load %arg4[%c0_12, %c0_13, %c0_14] : memref<1x128x128xbf16, #tpu.memory_space<vmem>>, vector<1x128x128xbf16>
    %36 = vector.shape_cast %35 : vector<1x128x128xbf16> to vector<128x128xbf16>
    %cst_15 = arith.constant dense<0.000000e+00> : vector<16x128xf32>
    %37 = tpu.matmul %34, %36, %cst_15 {dimension_numbers = #tpu.dot_dimension_numbers<[1], [0], [0], [1], [0, 0, 1, 1], [], []>} : vector<16x128xbf16>, vector<128x128xbf16>, vector<16x128xf32> -> vector<16x128xf32>
    %c0_16 = arith.constant 0 : index
    %c0_17 = arith.constant 0 : index
    %c0_18 = arith.constant 0 : index
    %38 = vector.load %arg5[%c0_16, %c0_17, %c0_18] : memref<1x1x128xf32, #tpu.memory_space<vmem>>, vector<1x1x128xf32>
    %39 = vector.shape_cast %38 : vector<1x1x128xf32> to vector<1x128xf32>
    %40 = vector.broadcast %39 : vector<1x128xf32> to vector<16x128xf32>
    %41 = arith.addf %37, %40 : vector<16x128xf32>
    %42 = arith.addf %3, %41 : vector<16x128xf32>
    %c0_19 = arith.constant 0 : index
    %c0_20 = arith.constant 0 : index
    %c0_21 = arith.constant 0 : index
    %43 = vector.load %arg6[%c0_19, %c0_20, %c0_21] : memref<1x1x128xf32, #tpu.memory_space<vmem>>, vector<1x1x128xf32>
    %44 = vector.shape_cast %43 : vector<1x1x128xf32> to vector<1x128xf32>
    %c0_22 = arith.constant 0 : index
    %c0_23 = arith.constant 0 : index
    %c0_24 = arith.constant 0 : index
    %45 = vector.load %arg7[%c0_22, %c0_23, %c0_24] : memref<1x1x128xf32, #tpu.memory_space<vmem>>, vector<1x1x128xf32>
    %46 = vector.shape_cast %45 : vector<1x1x128xf32> to vector<1x128xf32>
    %cst_25 = arith.constant dense<0.000000e+00> : vector<16xf32>
    %47 = vector.multi_reduction <add>, %42, %cst_25 [1] : vector<16x128xf32> to vector<16xf32>
    %48 = vector.shape_cast %47 : vector<16xf32> to vector<16x1xf32>
    %cst_26 = arith.constant 3.125000e-02 : f32
    %49 = vector.broadcast %cst_26 : f32 to vector<16x1xf32>
    %50 = arith.mulf %48, %49 : vector<16x1xf32>
    %51 = vector.broadcast %50 : vector<16x1xf32> to vector<16x128xf32>
    %52 = arith.subf %42, %51 : vector<16x128xf32>
    %cst_27 = arith.constant 0.000000e+00 : f32
    %53 = vector.broadcast %cst_27 : f32 to vector<16x128xf32>
    %54 = arith.select %6, %52, %53 : vector<16x128xi1>, vector<16x128xf32>
    %55 = arith.mulf %54, %54 : vector<16x128xf32>
    %cst_28 = arith.constant dense<0.000000e+00> : vector<16xf32>
    %56 = vector.multi_reduction <add>, %55, %cst_28 [1] : vector<16x128xf32> to vector<16xf32>
    %57 = vector.shape_cast %56 : vector<16xf32> to vector<16x1xf32>
    %cst_29 = arith.constant 3.125000e-02 : f32
    %58 = vector.broadcast %cst_29 : f32 to vector<16x1xf32>
    %59 = arith.mulf %57, %58 : vector<16x1xf32>
    %cst_30 = arith.constant 9.99999974E-6 : f32
    %60 = vector.broadcast %cst_30 : f32 to vector<16x1xf32>
    %61 = arith.addf %59, %60 : vector<16x1xf32>
    %62 = math.rsqrt %61 : vector<16x1xf32>
    %63 = vector.broadcast %62 : vector<16x1xf32> to vector<16x128xf32>
    %64 = arith.mulf %54, %63 : vector<16x128xf32>
    %65 = vector.broadcast %44 : vector<1x128xf32> to vector<16x128xf32>
    %66 = arith.mulf %64, %65 : vector<16x128xf32>
    %67 = vector.broadcast %46 : vector<1x128xf32> to vector<16x128xf32>
    %68 = arith.addf %66, %67 : vector<16x128xf32>
    %69 = arith.truncf %68 : vector<16x128xf32> to vector<16x128xbf16>
    %c0_31 = arith.constant 0 : index
    %c0_32 = arith.constant 0 : index
    %c0_33 = arith.constant 0 : index
    %70 = vector.load %arg8[%c0_31, %c0_32, %c0_33] : memref<1x128x128xbf16, #tpu.memory_space<vmem>>, vector<1x128x128xbf16>
    %71 = vector.shape_cast %70 : vector<1x128x128xbf16> to vector<128x128xbf16>
    %cst_34 = arith.constant dense<0.000000e+00> : vector<16x128xf32>
    %72 = tpu.matmul %69, %71, %cst_34 {dimension_numbers = #tpu.dot_dimension_numbers<[1], [0], [0], [1], [0, 0, 1, 1], [], []>} : vector<16x128xbf16>, vector<128x128xbf16>, vector<16x128xf32> -> vector<16x128xf32>
    %c0_35 = arith.constant 0 : index
    %c0_36 = arith.constant 0 : index
    %c0_37 = arith.constant 0 : index
    %73 = vector.load %arg9[%c0_35, %c0_36, %c0_37] : memref<1x1x128xf32, #tpu.memory_space<vmem>>, vector<1x1x128xf32>
    %74 = vector.shape_cast %73 : vector<1x1x128xf32> to vector<1x128xf32>
    %75 = vector.broadcast %74 : vector<1x128xf32> to vector<16x128xf32>
    %76 = arith.addf %72, %75 : vector<16x128xf32>
    %cst_38 = arith.constant 5.000000e-01 : f32
    %77 = vector.broadcast %cst_38 : f32 to vector<16x128xf32>
    %78 = arith.mulf %76, %77 : vector<16x128xf32>
    %cst_39 = arith.constant 0.707106769 : f32
    %79 = vector.broadcast %cst_39 : f32 to vector<16x128xf32>
    %80 = arith.mulf %76, %79 : vector<16x128xf32>
    %81 = math.absf %80 : vector<16x128xf32>
    %cst_40 = arith.constant 0.327591091 : f32
    %82 = vector.broadcast %cst_40 : f32 to vector<16x128xf32>
    %83 = arith.mulf %82, %81 : vector<16x128xf32>
    %cst_41 = arith.constant 1.000000e+00 : f32
    %84 = vector.broadcast %cst_41 : f32 to vector<16x128xf32>
    %85 = arith.addf %84, %83 : vector<16x128xf32>
    %86 = tpu.reciprocal %85 {approx = true} : vector<16x128xf32> -> vector<16x128xf32>
    %cst_42 = arith.constant 1.06140542 : f32
    %87 = vector.broadcast %cst_42 : f32 to vector<16x128xf32>
    %88 = arith.mulf %87, %86 : vector<16x128xf32>
    %cst_43 = arith.constant -1.45315206 : f32
    %89 = vector.broadcast %cst_43 : f32 to vector<16x128xf32>
    %90 = arith.addf %88, %89 : vector<16x128xf32>
    %91 = arith.mulf %90, %86 : vector<16x128xf32>
    %cst_44 = arith.constant 1.42141378 : f32
    %92 = vector.broadcast %cst_44 : f32 to vector<16x128xf32>
    %93 = arith.addf %91, %92 : vector<16x128xf32>
    %94 = arith.mulf %93, %86 : vector<16x128xf32>
    %cst_45 = arith.constant -0.284496725 : f32
    %95 = vector.broadcast %cst_45 : f32 to vector<16x128xf32>
    %96 = arith.addf %94, %95 : vector<16x128xf32>
    %97 = arith.mulf %96, %86 : vector<16x128xf32>
    %cst_46 = arith.constant 0.254829586 : f32
    %98 = vector.broadcast %cst_46 : f32 to vector<16x128xf32>
    %99 = arith.addf %97, %98 : vector<16x128xf32>
    %100 = arith.mulf %99, %86 : vector<16x128xf32>
    %cst_47 = arith.constant 0.000000e+00 : f32
    %101 = vector.broadcast %cst_47 : f32 to vector<16x128xf32>
    %102 = arith.subf %101, %81 : vector<16x128xf32>
    %103 = arith.mulf %102, %81 : vector<16x128xf32>
    %104 = math.exp %103 : vector<16x128xf32>
    %105 = arith.mulf %100, %104 : vector<16x128xf32>
    %cst_48 = arith.constant 1.000000e+00 : f32
    %106 = vector.broadcast %cst_48 : f32 to vector<16x128xf32>
    %107 = arith.subf %106, %105 : vector<16x128xf32>
    %cst_49 = arith.constant 0.000000e+00 : f32
    %108 = vector.broadcast %cst_49 : f32 to vector<16x128xf32>
    %109 = arith.cmpf oge, %80, %108 : vector<16x128xf32>
    %cst_50 = arith.constant 0.000000e+00 : f32
    %110 = vector.broadcast %cst_50 : f32 to vector<16x128xf32>
    %111 = arith.subf %110, %107 : vector<16x128xf32>
    %112 = arith.select %109, %107, %111 : vector<16x128xi1>, vector<16x128xf32>
    %cst_51 = arith.constant 1.000000e+00 : f32
    %113 = vector.broadcast %cst_51 : f32 to vector<16x128xf32>
    %114 = arith.addf %113, %112 : vector<16x128xf32>
    %115 = arith.mulf %78, %114 : vector<16x128xf32>
    %116 = arith.truncf %115 : vector<16x128xf32> to vector<16x128xbf16>
    %c0_52 = arith.constant 0 : index
    %c0_53 = arith.constant 0 : index
    %c0_54 = arith.constant 0 : index
    %117 = vector.load %arg10[%c0_52, %c0_53, %c0_54] : memref<1x128x128xbf16, #tpu.memory_space<vmem>>, vector<1x128x128xbf16>
    %118 = vector.shape_cast %117 : vector<1x128x128xbf16> to vector<128x128xbf16>
    %cst_55 = arith.constant dense<0.000000e+00> : vector<16x128xf32>
    %119 = tpu.matmul %116, %118, %cst_55 {dimension_numbers = #tpu.dot_dimension_numbers<[1], [0], [0], [1], [0, 0, 1, 1], [], []>} : vector<16x128xbf16>, vector<128x128xbf16>, vector<16x128xf32> -> vector<16x128xf32>
    %c0_56 = arith.constant 0 : index
    %c0_57 = arith.constant 0 : index
    %c0_58 = arith.constant 0 : index
    %120 = vector.load %arg11[%c0_56, %c0_57, %c0_58] : memref<1x1x128xf32, #tpu.memory_space<vmem>>, vector<1x1x128xf32>
    %121 = vector.shape_cast %120 : vector<1x1x128xf32> to vector<1x128xf32>
    %122 = vector.broadcast %121 : vector<1x128xf32> to vector<16x128xf32>
    %123 = arith.addf %119, %122 : vector<16x128xf32>
    %124 = arith.addf %68, %123 : vector<16x128xf32>
    %c0_59 = arith.constant 0 : index
    %c0_60 = arith.constant 0 : index
    %c0_61 = arith.constant 0 : index
    %125 = vector.load %arg12[%c0_59, %c0_60, %c0_61] : memref<1x1x128xf32, #tpu.memory_space<vmem>>, vector<1x1x128xf32>
    %126 = vector.shape_cast %125 : vector<1x1x128xf32> to vector<1x128xf32>
    %c0_62 = arith.constant 0 : index
    %c0_63 = arith.constant 0 : index
    %c0_64 = arith.constant 0 : index
    %127 = vector.load %arg13[%c0_62, %c0_63, %c0_64] : memref<1x1x128xf32, #tpu.memory_space<vmem>>, vector<1x1x128xf32>
    %128 = vector.shape_cast %127 : vector<1x1x128xf32> to vector<1x128xf32>
    %cst_65 = arith.constant dense<0.000000e+00> : vector<16xf32>
    %129 = vector.multi_reduction <add>, %124, %cst_65 [1] : vector<16x128xf32> to vector<16xf32>
    %130 = vector.shape_cast %129 : vector<16xf32> to vector<16x1xf32>
    %cst_66 = arith.constant 3.125000e-02 : f32
    %131 = vector.broadcast %cst_66 : f32 to vector<16x1xf32>
    %132 = arith.mulf %130, %131 : vector<16x1xf32>
    %133 = vector.broadcast %132 : vector<16x1xf32> to vector<16x128xf32>
    %134 = arith.subf %124, %133 : vector<16x128xf32>
    %cst_67 = arith.constant 0.000000e+00 : f32
    %135 = vector.broadcast %cst_67 : f32 to vector<16x128xf32>
    %136 = arith.select %6, %134, %135 : vector<16x128xi1>, vector<16x128xf32>
    %137 = arith.mulf %136, %136 : vector<16x128xf32>
    %cst_68 = arith.constant dense<0.000000e+00> : vector<16xf32>
    %138 = vector.multi_reduction <add>, %137, %cst_68 [1] : vector<16x128xf32> to vector<16xf32>
    %139 = vector.shape_cast %138 : vector<16xf32> to vector<16x1xf32>
    %cst_69 = arith.constant 3.125000e-02 : f32
    %140 = vector.broadcast %cst_69 : f32 to vector<16x1xf32>
    %141 = arith.mulf %139, %140 : vector<16x1xf32>
    %cst_70 = arith.constant 9.99999974E-6 : f32
    %142 = vector.broadcast %cst_70 : f32 to vector<16x1xf32>
    %143 = arith.addf %141, %142 : vector<16x1xf32>
    %144 = math.rsqrt %143 : vector<16x1xf32>
    %145 = vector.broadcast %144 : vector<16x1xf32> to vector<16x128xf32>
    %146 = arith.mulf %136, %145 : vector<16x128xf32>
    %147 = vector.broadcast %126 : vector<1x128xf32> to vector<16x128xf32>
    %148 = arith.mulf %146, %147 : vector<16x128xf32>
    %149 = vector.broadcast %128 : vector<1x128xf32> to vector<16x128xf32>
    %150 = arith.addf %148, %149 : vector<16x128xf32>
    %c0_71 = arith.constant 0 : index
    %c0_72 = arith.constant 0 : index
    %151 = vector.load %arg17[%c0_71, %c0_72] : memref<16x128xf32, #tpu.memory_space<vmem>>, vector<16x128xf32>
    tpu.vector_store %arg17[%c0_71, %c0_72], %150 {strides = array<i32>} : memref<16x128xf32, #tpu.memory_space<vmem>>, vector<16x128xf32>,
    %c1_i32 = arith.constant 1 : i32
    %152 = arith.cmpi eq, %arg0, %c1_i32 : i32
    %153 = arith.extui %152 : i1 to i32
    %c0_i32_73 = arith.constant 0 : i32
    %154 = arith.cmpi ne, %153, %c0_i32_73 : i32
    scf.if %154 {
      %155 = vector.shape_cast %150 : vector<16x128xf32> to vector<2x8x128xf32>
      %156 = vector.extract_strided_slice %155 {offsets = [0, 0, 0], sizes = [2, 1, 128], strides = [1, 1, 1]} : vector<2x8x128xf32> to vector<2x1x128xf32>
      %157 = vector.shape_cast %156 : vector<2x1x128xf32> to vector<2x128xf32>
      %158 = arith.truncf %157 : vector<2x128xf32> to vector<2x128xbf16>
      %c0_74 = arith.constant 0 : index
      %c0_75 = arith.constant 0 : index
      %159 = vector.load %arg14[%c0_74, %c0_75] : memref<128x128xbf16, #tpu.memory_space<vmem>>, vector<128x128xbf16>
      %cst_76 = arith.constant dense<0.000000e+00> : vector<2x128xf32>
      %160 = tpu.matmul %158, %159, %cst_76 {dimension_numbers = #tpu.dot_dimension_numbers<[1], [0], [0], [1], [0, 0, 1, 1], [], []>} : vector<2x128xbf16>, vector<128x128xbf16>, vector<2x128xf32> -> vector<2x128xf32>
      %c0_77 = arith.constant 0 : index
      %c0_78 = arith.constant 0 : index
      %161 = vector.load %arg15[%c0_77, %c0_78] : memref<1x128xf32, #tpu.memory_space<vmem>>, vector<1x128xf32>
      %162 = vector.broadcast %161 : vector<1x128xf32> to vector<2x128xf32>
      %163 = arith.addf %160, %162 : vector<2x128xf32>
      %c0_79 = arith.constant 0 : index
      %c0_80 = arith.constant 0 : index
      %164 = vector.load %arg16[%c0_79, %c0_80] : memref<2x128xf32, #tpu.memory_space<vmem>>, vector<2x128xf32>
      tpu.vector_store %arg16[%c0_79, %c0_80], %163 {strides = array<i32>} : memref<2x128xf32, #tpu.memory_space<vmem>>, vector<2x128xf32>,
    } else {
    }
    return
  }
  func.func @transform_0(%arg0: i32) -> (i32, i32) {
    %c0_i32 = arith.constant 0 : i32
    %c0_i32_0 = arith.constant 0 : i32
    %c0_i32_1 = arith.constant 0 : i32
    return %c0_i32, %c0_i32_0 : i32, i32
  }
  func.func @transform_1(%arg0: i32) -> (i32, i32, i32) {
    %c0_i32 = arith.constant 0 : i32
    %c0_i32_0 = arith.constant 0 : i32
    %c0_i32_1 = arith.constant 0 : i32
    return %arg0, %c0_i32, %c0_i32_0 : i32, i32, i32
  }
  func.func @transform_2(%arg0: i32) -> (i32, i32, i32) {
    %c0_i32 = arith.constant 0 : i32
    %c0_i32_0 = arith.constant 0 : i32
    %c0_i32_1 = arith.constant 0 : i32
    return %arg0, %c0_i32, %c0_i32_0 : i32, i32, i32
  }
  func.func @transform_3(%arg0: i32) -> (i32, i32, i32) {
    %c0_i32 = arith.constant 0 : i32
    %c0_i32_0 = arith.constant 0 : i32
    %c0_i32_1 = arith.constant 0 : i32
    return %arg0, %c0_i32, %c0_i32_0 : i32, i32, i32
  }
  func.func @transform_4(%arg0: i32) -> (i32, i32, i32) {
    %c0_i32 = arith.constant 0 : i32
    %c0_i32_0 = arith.constant 0 : i32
    %c0_i32_1 = arith.constant 0 : i32
    return %arg0, %c0_i32, %c0_i32_0 : i32, i32, i32
  }
  func.func @transform_5(%arg0: i32) -> (i32, i32, i32) {
    %c0_i32 = arith.constant 0 : i32
    %c0_i32_0 = arith.constant 0 : i32
    %c0_i32_1 = arith.constant 0 : i32
    return %arg0, %c0_i32, %c0_i32_0 : i32, i32, i32
  }
  func.func @transform_6(%arg0: i32) -> (i32, i32, i32) {
    %c0_i32 = arith.constant 0 : i32
    %c0_i32_0 = arith.constant 0 : i32
    %c0_i32_1 = arith.constant 0 : i32
    return %arg0, %c0_i32, %c0_i32_0 : i32, i32, i32
  }
  func.func @transform_7(%arg0: i32) -> (i32, i32, i32) {
    %c0_i32 = arith.constant 0 : i32
    %c0_i32_0 = arith.constant 0 : i32
    %c0_i32_1 = arith.constant 0 : i32
    return %arg0, %c0_i32, %c0_i32_0 : i32, i32, i32
  }
  func.func @transform_8(%arg0: i32) -> (i32, i32, i32) {
    %c0_i32 = arith.constant 0 : i32
    %c0_i32_0 = arith.constant 0 : i32
    %c0_i32_1 = arith.constant 0 : i32
    return %arg0, %c0_i32, %c0_i32_0 : i32, i32, i32
  }
  func.func @transform_9(%arg0: i32) -> (i32, i32, i32) {
    %c0_i32 = arith.constant 0 : i32
    %c0_i32_0 = arith.constant 0 : i32
    %c0_i32_1 = arith.constant 0 : i32
    return %arg0, %c0_i32, %c0_i32_0 : i32, i32, i32
  }
  func.func @transform_10(%arg0: i32) -> (i32, i32, i32) {
    %c0_i32 = arith.constant 0 : i32
    %c0_i32_0 = arith.constant 0 : i32
    %c0_i32_1 = arith.constant 0 : i32
    return %arg0, %c0_i32, %c0_i32_0 : i32, i32, i32
  }
  func.func @transform_11(%arg0: i32) -> (i32, i32, i32) {
    %c0_i32 = arith.constant 0 : i32
    %c0_i32_0 = arith.constant 0 : i32
    %c0_i32_1 = arith.constant 0 : i32
    return %arg0, %c0_i32, %c0_i32_0 : i32, i32, i32
  }
  func.func @transform_12(%arg0: i32) -> (i32, i32, i32) {
    %c0_i32 = arith.constant 0 : i32
    %c0_i32_0 = arith.constant 0 : i32
    %c0_i32_1 = arith.constant 0 : i32
    return %arg0, %c0_i32, %c0_i32_0 : i32, i32, i32
  }
  func.func @transform_13(%arg0: i32) -> (i32, i32) {
    %c0_i32 = arith.constant 0 : i32
    %c0_i32_0 = arith.constant 0 : i32
    %c0_i32_1 = arith.constant 0 : i32
    return %c0_i32, %c0_i32_0 : i32, i32
  }
  func.func @transform_14(%arg0: i32) -> (i32, i32) {
    %c0_i32 = arith.constant 0 : i32
    %c0_i32_0 = arith.constant 0 : i32
    %c0_i32_1 = arith.constant 0 : i32
    return %c0_i32, %c0_i32_0 : i32, i32
  }
  func.func @transform_15(%arg0: i32) -> (i32, i32) {
    %c0_i32 = arith.constant 0 : i32
    %c0_i32_0 = arith.constant 0 : i32
    %c0_i32_1 = arith.constant 0 : i32
    return %c0_i32, %c0_i32_0 : i32, i32
  }
}

</mosaic_0001>

<bundles_post_ra>
// kernel: mulan_text_encoder_forward.1
= control target key start
LH: loop header
LB: loop body
LE: loop exit
PB: predicated region body
PF: predicated region fallthrough
CT: control target
= control target key end

     0   :  { %s4343_s0 = inlined_call_operand.hbm [shape: f32[16,128], index: 0, kind: input, shape index: {}]   ;;  %s4344_s1 = inlined_call_operand.hbm [shape: bf16[2,128,384], index: 1, kind: input, shape index: {}]   ;;  %s4345_s2 = inlined_call_operand.hbm [shape: f32[2,1,384], index: 2, kind: input, shape index: {}]   ;;  %s4346_s3 = inlined_call_operand.hbm [shape: bf16[2,128,128], index: 3, kind: input, shape index: {}]   ;;  %s4347_s4 = inlined_call_operand.hbm [shape: f32[2,1,128], index: 4, kind: input, shape index: {}]   ;;  %s4348_s5 = inlined_call_operand.hbm [shape: f32[2,1,128], index: 5, kind: input, shape index: {}]   ;;  %s4349_s6 = inlined_call_operand.hbm [shape: f32[2,1,128], index: 6, kind: input, shape index: {}]   ;;  %s4350_s7 = inlined_call_operand.hbm [shape: bf16[2,128,128], index: 7, kind: input, shape index: {}]   ;;  %s4351_s8 = inlined_call_operand.hbm [shape: f32[2,1,128], index: 8, kind: input, shape index: {}]   ;;  %s4352_s9 = inlined_call_operand.hbm [shape: bf16[2,128,128], index: 9, kind: input, shape index: {}]   ;;  %s4353_s10 = inlined_call_operand.hbm [shape: f32[2,1,128], index: 10, kind: input, shape index: {}]   ;;  %s4354_s11 = inlined_call_operand.hbm [shape: f32[2,1,128], index: 11, kind: input, shape index: {}]   ;;  %s4355_s12 = inlined_call_operand.hbm [shape: f32[2,1,128], index: 12, kind: input, shape index: {}]   ;;  %s4356_s13 = inlined_call_operand.hbm [shape: bf16[128,128], index: 13, kind: input, shape index: {}]   ;;  %s4357_s14 = inlined_call_operand.hbm [shape: f32[1,128], index: 14, kind: input, shape index: {}]   ;;  %s4358_s15 = inlined_call_operand.hbm [shape: f32[2,128], index: 15, kind: output, shape index: {}]  }
   0x1   :  { %4395 = sst [smem:[#allocation44_spill]] %s4344_s1 }
   0x2   :  { %4396 = sst [smem:[#allocation45_spill]] %s4346_s3 }
   0x3   :  { %4397 = sst [smem:[#allocation46_spill]] %s4348_s5 }
   0x4   :  { %4398 = sst [smem:[#allocation47_spill]] %s4349_s6 }
   0x5   :  { %4399 = sst [smem:[#allocation48_spill]] %s4351_s8 }
   0x6   :  { %4400 = sst [smem:[#allocation49_spill]] %s4353_s10 }
   0x7   :  { %4401 = sst [smem:[#allocation50_spill]] %s4355_s12 }
   0x8   :  { %4402 = sst [smem:[#allocation51_spill]] %s4356_s13 }
   0x9   :  { %4403 = sst [smem:[#allocation52_spill]] %s4358_s15 }
   0xa   :  { %20 = vsyncpa [#allocation4], 0 }
   0xb   :  { %21 = vsyncpa [#allocation7], 0 }
   0xc   :  { %23 = vsyncpa [#allocation7 + $0x1], 0 }
   0xd   :  { %24 = vsyncpa [#allocation10], 0 }
   0xe   :  { %26 = vsyncpa [#allocation10 + $0x1], 0 }
   0xf   :  { %27 = vsyncpa [#allocation13], 0 }
  0x10   :  { %29 = vsyncpa [#allocation13 + $0x1], 0 }
  0x11   :  { %30 = vsyncpa [#allocation16], 0 }
  0x12   :  { %32 = vsyncpa [#allocation16 + $0x1], 0 }
  0x13   :  { %33 = vsyncpa [#allocation19], 0 }
  0x14   :  { %35 = vsyncpa [#allocation19 + $0x1], 0 }
  0x15   :  { %36 = vsyncpa [#allocation22], 0 }
  0x16   :  { %38 = vsyncpa [#allocation22 + $0x1], 0 }
  0x17   :  { %39 = vsyncpa [#allocation25], 0 }
  0x18   :  { %40 = vsyncpa [#allocation5], 0  ;;  %s3577_s18 = smov 0   ;;  %s3579_s19 = smov 0  }
  0x19   :  { %s3581_s20 = smov 0   ;;  %s3583_s21 = smov 0  }
  0x1a LB: > { %4404 = sst [smem:[#allocation37_spill]] %s3460_s19  ;;  %s3596_s22 = sadd.s32 4294967295, %s3468_s21   ;;  %s3468_s21 = sphi %s3583_s21, %s4460_s21   ;;  %s3464_s20 = sphi %s3581_s20, %s4463_s20   ;;  %s3460_s19 = sphi %s3579_s19, %s4462_s19   ;;  %s3456_s18 = sphi %s3577_s18, %s4461_s18  }
  0x1b   : > { %4405 = sst [smem:[#allocation38_spill]] %s3464_s20  ;;  %s3599_s23 = sadd.s32 1, %s3468_s21  }
  0x1c   : > { %4406 = sst [smem:[#allocation39_spill]] %s3596_s22  ;;  %s71_s24 = ssub.s32 %s3468_s21, %s3599_s23 }
  0x1d   : > { %4407 = sst [smem:[#allocation40_spill]] %s3599_s23  ;;  %s74_s25 = sadd.s32 1, %s3464_s20 }
  0x1e   : > { %p72_p0 = scmp.eq.s32.totalorder %s71_s24, 0  ;;  %p81_p1 = scmp.ne.s32.totalorder %s3464_s20, %s3460_s19 }
  0x1f   : > { %p82_p2 = scmp.eq.s32.totalorder %s3468_s21, 0  ;;  %p87_p3 = scmp.ne.s32.totalorder %s3460_s19, %s3456_s18 }
  0x20   : > { %s3609_s26 = scalar_select %p72_p0, %s3464_s20, %s74_s25  }
  0x21   : > { %p3611_p4 = por %p82_p2, %p81_p1  ;;  %p4366_p5 = scmp.eq.s32.totalorder %s3596_s22, 0 }
  0x22   : > { %4408 = sst [smem:[#allocation41_spill]] %s3609_s26  ;;  %p2417_p6 = scmp.ge.s32.totalorder %s3468_s21, 1 }
  0x23   : > { %p447_p7 = scmp.lt.s32.totalorder %s3468_s21, 3  ;;  %p3620_p8 = por %p4366_p5, %p87_p3 }
  0x24   : > { %s3470_s30 = smov [#allocation24]   ;;  %p2791_p13 = scmp.lt.s32.totalorder %s3468_s21, 2 }
  0x25   : > { %s4410_s28 = scalar_select %p3620_p8, 1, 0 }
  0x26   : > { %p3625_p10 = pnand %p2417_p6, %p447_p7  ;;  %s472_s16 = sshll.u32 %s3470_s30, 4  ;;  %s473_s16 = int_to_ptr.vmem [resolvable:$true] %s472_s16 }
  0x27   : > { %4411 = sst [smem:[#allocation42_spill]] %s4410_s28  ;;  %s3639_s18 = sand.u32 1, %s3464_s20  }
  0x28   : > { %s4412_s29 = scalar_select %p3625_p10, 1, 0 }
  0x29   : > { %p2741_p11 = pneg %p3625_p10  ;;  %s3642_s24 = sand.u32 1, %s3468_s21  }
  0x2a   : > { %4413 = sst [smem:[#allocation43_spill]] %s4412_s29  ;;  %p3646_p0 = pnand %p2791_p13, %p3611_p4 }
  0x2b   : > { %p3633_p12 = pnand %p2741_p11, %p4366_p5  ;;  %s4416_s13 = sld [smem:[#allocation51_spill]] }
  0x2c   : > { %s4415_s25 = scalar_select %p3646_p0, 1, 0 }
  0x2d   : > { %s4414_s17 = scalar_select %p3633_p12, 1, 0 }
  0x2e   : > { %p3658_p2 = pneg %p3633_p12 }
  0x30   : > { %s4417_s19 = scalar_select %p3658_p2, 1, 0 }
  0x31   : > { %s2932_s23 = scalar_lea.hbm %s4416_s13, 1024 }
  0x32   : > { %p2933_p1 = scmp.ne.s32.totalorder %s4416_s13, %s2932_s23  ;;  %p2939_p6 = scmp.lt.u32.totalorder %s2932_s23, %s4416_s13 }
  0x34   : > { %p2935_p3 = pnand %p3658_p2, %p2933_p1 }
  0x36   : > { %p2936_p4 = pneg %p2935_p3 }
  0x38   : > { %p2941_p7 = pnand %p2939_p6, %p2936_p4 }
  0x3a   : > { %2944 = shalt.err (!%p2941_p7)
}
  0x3b   : > { %s2945_s26 = scalar_lea.vmem %s473_s16, 1024  ;;  %p2953_p5 = scmp.lt.s32.totalorder %s473_s16, %s473_s16 }
  0x3c   : > { %p2946_p11 = scmp.ne.s32.totalorder %s473_s16, %s2945_s26  ;;  %p2954_p8 = scmp.lt.s32.totalorder %s2945_s26, %s2945_s26 }
  0x3e   : > { %p2948_p13 = pnand %p2946_p11, %p3658_p2  ;;  %p2955_p10 = por %p2954_p8, %p2953_p5 }
  0x40   : > { %p2949_p9 = pneg %p2948_p13 }
  0x42   : > { %p2956_p0 = pnand %p2955_p10, %p2949_p9 }
  0x44   : > { %2959 = shalt.err (!%p2956_p0)
}
  0x45   : > { %s4382_s15 = smov 64   ;;  %s4384_s20 = smov 4  }
  0x46   : > { %2747 = dma.hbm_to_vmem [thread:$0]  (!%p3633_p12), %s4416_s13, 1024, %s473_s16, [#allocation25], %s4382_s15, %s4382_s15, %s4384_s20  }
  0x47   : > { %s2695_s30 = smul.u32 192, %s3639_s18  ;;  %s4418_s1 = sld [smem:[#allocation44_spill]] }
  0x48   : > { %s2696_s27 = smul.u32 3072, %s3468_s21  ;;  %s3687_s8 = sshll.u32 %s3639_s18, 6 }
  0x49   : > { %s501_s12 = scalar_lea.vmem [#allocation6], %s2695_s30  ;;  %s4386_s6 = scalar_lea.sflag [#allocation7], %s3642_s24 }
  0x4a   : > { %s508_s10 = sshll.u32 %s501_s12, 4  ;;  %p4419_p8 = scmp.ne.s32.totalorder %s4415_s25, 0  ;;  %s3684_s10 = int_to_ptr.vmem [resolvable:$true] %s508_s10 }
  0x4c   : > { %p3694_p9 = pneg %p4419_p8 }
  0x4d   : > { %s3682_s29 = scalar_lea.hbm %s4418_s1, %s2696_s27  ;;  %s2965_s12 = scalar_lea.hbm %s4418_s1, 6144 }
  0x4e   : > { %s2960_s23 = scalar_lea.hbm %s3682_s29, 3072  ;;  %p2966_p1 = scmp.lt.u32.totalorder %s3682_s29, %s4418_s1 }
  0x4f   : > { %p2961_p5 = scmp.ne.s32.totalorder %s3682_s29, %s2960_s23  ;;  %p2967_p3 = scmp.lt.u32.totalorder %s2965_s12, %s2960_s23 }
  0x50   : > { %s4420_s16 = scalar_select %p3694_p9, 1, 0 }
  0x51   : > { %p2963_p10 = pnand %p3694_p9, %p2961_p5  ;;  %p2968_p4 = por %p2967_p3, %p2966_p1 }
  0x52   : > { %p2969_p6 = scmp.lt.u32.totalorder %s2960_s23, %s3682_s29 }
  0x53   : > { %p2964_p0 = pneg %p2963_p10 }
  0x54   : > { %p2970_p7 = por %p2969_p6, %p2968_p4 }
  0x56   : > { %p2971_p11 = pnand %p2970_p7, %p2964_p0 }
  0x58   : > { %2974 = shalt.err (!%p2971_p11)
}
  0x59   : > { %s2975_s26 = scalar_lea.vmem %s3684_s10, 3072  ;;  %s3473_s22 = smov [#allocation6]  }
  0x5a   : > { %p2976_p13 = scmp.ne.s32.totalorder %s3684_s10, %s2975_s26  ;;  %s2980_s28 = sshll.u32 %s3473_s22, 4  ;;  %s2981_s28 = int_to_ptr.vmem [resolvable:$false] %s2980_s28 }
  0x5b   : > { %s2982_s30 = scalar_lea.vmem %s2981_s28, 6144  ;;  %p2983_p12 = scmp.lt.s32.totalorder %s3684_s10, %s2981_s28 }
  0x5c   : > { %p2978_p5 = pnand %p2976_p13, %p3694_p9  ;;  %p2984_p2 = scmp.lt.s32.totalorder %s2982_s30, %s2975_s26 }
  0x5e   : > { %p2979_p10 = pneg %p2978_p5  ;;  %p2985_p1 = por %p2984_p2, %p2983_p12 }
  0x60   : > { %p2986_p3 = pnand %p2985_p1, %p2979_p10 }
  0x62   : > { %2989 = shalt.err (!%p2986_p3)
}
  0x63   : > { %s3474_s23 = smov 192   ;;  %s3475_s12 = smov 12  }
  0x64   : > { %2754 = dma.hbm_to_vmem [thread:$0]  (!%p4419_p8), %s3682_s29, 3072, %s3684_s10, %s4386_s6, %s3474_s23, %s3474_s23, %s3475_s12  }
  0x65   : > { %s3720_s27 = sshll.u32 %s3468_s21, 10  ;;  %s4421_s3 = sld [smem:[#allocation45_spill]] }
  0x66   : > { %s541_s30 = scalar_lea.vmem [#allocation9], %s3687_s8  ;;  %s3732_s20 = sshll.u32 %s3468_s21, 4 }
  0x67   : > { %s548_s15 = sshll.u32 %s541_s30, 4  ;;  %s4387_s1 = scalar_lea.sflag [#allocation10], %s3642_s24  ;;  %s3729_s15 = int_to_ptr.vmem [resolvable:$true] %s548_s15 }
  0x6b   : > { %s3726_s28 = scalar_lea.hbm %s4421_s3, %s3720_s27  ;;  %s2995_s12 = scalar_lea.hbm %s4421_s3, 2048 }
  0x6c   : > { %s2990_s10 = scalar_lea.hbm %s3726_s28, 1024  ;;  %p2996_p4 = scmp.lt.u32.totalorder %s3726_s28, %s4421_s3 }
  0x6d   : > { %p2991_p12 = scmp.ne.s32.totalorder %s3726_s28, %s2990_s10  ;;  %p2997_p6 = scmp.lt.u32.totalorder %s2995_s12, %s2990_s10 }
  0x6e   : > { %p2999_p11 = scmp.lt.u32.totalorder %s2990_s10, %s3726_s28 }
  0x6f   : > { %p2993_p2 = pnand %p2991_p12, %p3694_p9  ;;  %p2998_p7 = por %p2997_p6, %p2996_p4 }
  0x71   : > { %p2994_p0 = pneg %p2993_p2  ;;  %p3000_p13 = por %p2999_p11, %p2998_p7 }
  0x73   : > { %p3001_p5 = pnand %p3000_p13, %p2994_p0 }
  0x75   : > { %3004 = shalt.err (!%p3001_p5)
}
  0x76   : > { %s3005_s30 = scalar_lea.vmem %s3729_s15, 1024  ;;  %s3476_s29 = smov [#allocation9]  }
  0x77   : > { %p3006_p10 = scmp.ne.s32.totalorder %s3729_s15, %s3005_s30  ;;  %s3010_s23 = sshll.u32 %s3476_s29, 4  ;;  %s3011_s23 = int_to_ptr.vmem [resolvable:$false] %s3010_s23 }
  0x78   : > { %s3012_s26 = scalar_lea.vmem %s3011_s23, 2048  ;;  %p3013_p12 = scmp.lt.s32.totalorder %s3729_s15, %s3011_s23 }
  0x79   : > { %p3008_p1 = pnand %p3006_p10, %p3694_p9  ;;  %p3014_p2 = scmp.lt.s32.totalorder %s3012_s26, %s3005_s30 }
  0x7b   : > { %p3009_p3 = pneg %p3008_p1  ;;  %p3015_p4 = por %p3014_p2, %p3013_p12 }
  0x7d   : > { %p3016_p6 = pnand %p3015_p4, %p3009_p3 }
  0x7f   : > { %3019 = shalt.err (!%p3016_p6)
}
  0x80   : > { %s4422_s10 = smov 4   ;;  %s4423_s12 = smov 64  }
  0x81   : > { %2760 = dma.hbm_to_vmem [thread:$0]  (!%p4419_p8), %s3726_s28, 1024, %s3729_s15, %s4387_s1, %s4423_s12, %s4423_s12, %s4422_s10  }
  0x82   : > { %s4424_s5 = sld [smem:[#allocation46_spill]]  ;;  %s578_s23 = scalar_lea.vmem [#allocation12], %s3639_s18 }
  0x83   : > { %s585_s26 = sshll.u32 %s578_s23, 4  ;;  %s586_s26 = int_to_ptr.vmem [resolvable:$true] %s585_s26 }
  0x88   : > { %s3765_s30 = scalar_lea.hbm %s4424_s5, %s3732_s20  ;;  %s3025_s28 = scalar_lea.hbm %s4424_s5, 32 }
  0x89   : > { %s3020_s3 = scalar_lea.hbm %s3765_s30, 16  ;;  %p3026_p13 = scmp.lt.u32.totalorder %s3765_s30, %s4424_s5 }
  0x8a   : > { %p3021_p0 = scmp.ne.s32.totalorder %s3765_s30, %s3020_s3  ;;  %p3027_p5 = scmp.lt.u32.totalorder %s3025_s28, %s3020_s3 }
  0x8b   : > { %p3029_p1 = scmp.lt.u32.totalorder %s3020_s3, %s3765_s30 }
  0x8c   : > { %p3023_p7 = pnand %p3021_p0, %p3694_p9  ;;  %p3028_p10 = por %p3027_p5, %p3026_p13 }
  0x8e   : > { %p3024_p11 = pneg %p3023_p7  ;;  %p3030_p3 = por %p3029_p1, %p3028_p10 }
  0x90   : > { %p3031_p12 = pnand %p3030_p3, %p3024_p11 }
  0x92   : > { %3034 = shalt.err (!%p3031_p12)
}
  0x93   : > { %s3035_s23 = scalar_lea.vmem %s586_s26, 16  ;;  %s3477_s1 = smov [#allocation12]  }
  0x94   : > { %p3036_p2 = scmp.ne.s32.totalorder %s586_s26, %s3035_s23  ;;  %s3040_s6 = sshll.u32 %s3477_s1, 4  ;;  %s3041_s6 = int_to_ptr.vmem [resolvable:$false] %s3040_s6 }
  0x95   : > { %s3042_s13 = scalar_lea.vmem %s3041_s6, 32  ;;  %p3043_p0 = scmp.lt.s32.totalorder %s586_s26, %s3041_s6 }
  0x96   : > { %p3038_p4 = pnand %p3036_p2, %p3694_p9  ;;  %p3044_p7 = scmp.lt.s32.totalorder %s3042_s13, %s3035_s23 }
  0x98   : > { %p3039_p6 = pneg %p3038_p4  ;;  %p3045_p8 = por %p3044_p7, %p3043_p0 }
  0x9a   : > { %p3046_p5 = pnand %p3045_p8, %p3039_p6 }
  0x9c   : > { %3049 = shalt.err (!%p3046_p5)
}
  0x9d   : > { %p4425_p13 = scmp.ne.s32.totalorder %s4415_s25, 0  ;;  %s4426_s3 = scalar_lea.sflag [#allocation13], %s3642_s24 }
  0x9e   : > { %s3792_s1 = scalar_lea.hbm %s4350_s7, %s3720_s27  ;;  %s613_s6 = scalar_lea.vmem [#allocation15], %s3687_s8 }
  0x9f   : > { %2766 = dma.hbm_to_vmem [thread:$0]  (!%p4425_p13), %s3765_s30, 16, %s586_s26, %s4426_s3  }
  0xa0   : > { %s620_s22 = sshll.u32 %s613_s6, 4  ;;  %s4392_s29 = scalar_lea.sflag [#allocation16], %s3642_s24  ;;  %s3795_s22 = int_to_ptr.vmem [resolvable:$true] %s620_s22 }
  0xa1   : > { %s3050_s23 = scalar_lea.hbm %s3792_s1, 1024  ;;  %s3055_s13 = scalar_lea.hbm %s4350_s7, 2048 }
  0xa2   : > { %p3051_p8 = scmp.ne.s32.totalorder %s3792_s1, %s3050_s23  ;;  %p3056_p1 = scmp.lt.u32.totalorder %s3792_s1, %s4350_s7 }
  0xa3   : > { %p3057_p3 = scmp.lt.u32.totalorder %s3055_s13, %s3050_s23  ;;  %p3059_p2 = scmp.lt.u32.totalorder %s3050_s23, %s3792_s1 }
  0xa4   : > { %p3053_p11 = pnand %p3051_p8, %p3694_p9 }
  0xa5   : > { %p3058_p12 = por %p3057_p3, %p3056_p1 }
  0xa6   : > { %p3054_p10 = pneg %p3053_p11 }
  0xa7   : > { %p3060_p4 = por %p3059_p2, %p3058_p12 }
  0xa9   : > { %p3061_p6 = pnand %p3060_p4, %p3054_p10 }
  0xab   : > { %3064 = shalt.err (!%p3061_p6)
}
  0xac   : > { %s3065_s28 = scalar_lea.vmem %s3795_s22, 1024  ;;  %s3478_s6 = smov [#allocation15]  }
  0xad   : > { %p3066_p0 = scmp.ne.s32.totalorder %s3795_s22, %s3065_s28  ;;  %s3070_s30 = sshll.u32 %s3478_s6, 4  ;;  %s3071_s30 = int_to_ptr.vmem [resolvable:$false] %s3070_s30 }
  0xae   : > { %s3072_s26 = scalar_lea.vmem %s3071_s30, 2048  ;;  %p3073_p8 = scmp.lt.s32.totalorder %s3795_s22, %s3071_s30 }
  0xaf   : > { %p3068_p7 = pnand %p3066_p0, %p3694_p9  ;;  %p3074_p11 = scmp.lt.s32.totalorder %s3072_s26, %s3065_s28 }
  0xb1   : > { %p3069_p5 = pneg %p3068_p7  ;;  %p3075_p1 = por %p3074_p11, %p3073_p8 }
  0xb3   : > { %p3076_p3 = pnand %p3075_p1, %p3069_p5 }
  0xb5   : > { %3079 = shalt.err (!%p3076_p3)
}
  0xb6   : > { %2772 = dma.hbm_to_vmem [thread:$0]  (!%p4425_p13), %s3792_s1, 1024, %s3795_s22, %s4392_s29, %s4423_s12, %s4423_s12, %s4422_s10  }
  0xb7   : > { %s3828_s3 = scalar_lea.hbm %s4352_s9, %s3720_s27  ;;  %s651_s15 = scalar_lea.vmem [#allocation18], %s3687_s8 }
  0xb8   : > { %s658_s28 = sshll.u32 %s651_s15, 4  ;;  %s4391_s6 = scalar_lea.sflag [#allocation19], %s3642_s24  ;;  %s3831_s28 = int_to_ptr.vmem [resolvable:$true] %s658_s28 }
  0xb9   : > { %s3080_s30 = scalar_lea.hbm %s3828_s3, 1024  ;;  %s3085_s26 = scalar_lea.hbm %s4352_s9, 2048 }
  0xba   : > { %p3081_p10 = scmp.ne.s32.totalorder %s3828_s3, %s3080_s30  ;;  %p3086_p4 = scmp.lt.u32.totalorder %s3828_s3, %s4352_s9 }
  0xbb   : > { %p3087_p6 = scmp.lt.u32.totalorder %s3085_s26, %s3080_s30  ;;  %p3089_p7 = scmp.lt.u32.totalorder %s3080_s30, %s3828_s3 }
  0xbc   : > { %p3083_p12 = pnand %p3081_p10, %p3694_p9 }
  0xbd   : > { %p3088_p0 = por %p3087_p6, %p3086_p4 }
  0xbe   : > { %p3084_p2 = pneg %p3083_p12 }
  0xbf   : > { %p3090_p5 = por %p3089_p7, %p3088_p0 }
  0xc1   : > { %p3091_p8 = pnand %p3090_p5, %p3084_p2 }
  0xc3   : > { %3094 = shalt.err (!%p3091_p8)
}
  0xc4   : > { %s3095_s8 = scalar_lea.vmem %s3831_s28, 1024  ;;  %s3479_s13 = smov [#allocation18]  }
  0xc5   : > { %p3096_p11 = scmp.ne.s32.totalorder %s3831_s28, %s3095_s8  ;;  %s3100_s15 = sshll.u32 %s3479_s13, 4  ;;  %s3101_s15 = int_to_ptr.vmem [resolvable:$false] %s3100_s15 }
  0xc6   : > { %s3102_s1 = scalar_lea.vmem %s3101_s15, 2048  ;;  %p3103_p10 = scmp.lt.s32.totalorder %s3831_s28, %s3101_s15 }
  0xc7   : > { %p3098_p1 = pnand %p3096_p11, %p3694_p9  ;;  %p3104_p12 = scmp.lt.s32.totalorder %s3102_s1, %s3095_s8 }
  0xc9   : > { %p3099_p3 = pneg %p3098_p1  ;;  %p3105_p4 = por %p3104_p12, %p3103_p10 }
  0xcb   : > { %p3106_p6 = pnand %p3105_p4, %p3099_p3 }
  0xcd   : > { %3109 = shalt.err (!%p3106_p6)
}
  0xce   : > { %2778 = dma.hbm_to_vmem [thread:$0]  (!%p4425_p13), %s3828_s3, 1024, %s3831_s28, %s4391_s6, %s4423_s12, %s4423_s12, %s4422_s10  }
  0xcf   : > { %s3864_s26 = scalar_lea.hbm %s4354_s11, %s3732_s20  ;;  %s688_s27 = scalar_lea.vmem [#allocation21], %s3639_s18 }
  0xd0   : > { %s695_s23 = sshll.u32 %s688_s27, 4  ;;  %s3480_s8 = smov [#allocation3]   ;;  %s3867_s23 = int_to_ptr.vmem [resolvable:$true] %s695_s23 }
  0xd1   : > { %s3869_s13 = sshll.u32 %s3480_s8, 4  ;;  %s4390_s15 = scalar_lea.sflag [#allocation22], %s3642_s24  ;;  %s460_s13 = int_to_ptr.vmem [resolvable:$true] %s3869_s13 }
  0xd2   : > { %s3110_s1 = scalar_lea.hbm %s3864_s26, 16  ;;  %s3115_s3 = scalar_lea.hbm %s4354_s11, 32 }
  0xd3   : > { %p3111_p2 = scmp.ne.s32.totalorder %s3864_s26, %s3110_s1  ;;  %p3116_p5 = scmp.lt.u32.totalorder %s3864_s26, %s4354_s11 }
  0xd4   : > { %p3117_p8 = scmp.lt.u32.totalorder %s3115_s3, %s3110_s1  ;;  %p3119_p1 = scmp.lt.u32.totalorder %s3110_s1, %s3864_s26 }
  0xd5   : > { %p3113_p0 = pnand %p3111_p2, %p3694_p9 }
  0xd6   : > { %p3118_p11 = por %p3117_p8, %p3116_p5 }
  0xd7   : > { %p3114_p7 = pneg %p3113_p0 }
  0xd8   : > { %p3120_p3 = por %p3119_p1, %p3118_p11 }
  0xda   : > { %p3121_p10 = pnand %p3120_p3, %p3114_p7 }
  0xdc   : > { %3124 = shalt.err (!%p3121_p10)
}
  0xdd   : > { %s3125_s22 = scalar_lea.vmem %s3867_s23, 16  ;;  %s3481_s27 = smov [#allocation21]  }
  0xde   : > { %p3126_p12 = scmp.ne.s32.totalorder %s3867_s23, %s3125_s22  ;;  %s3130_s8 = sshll.u32 %s3481_s27, 4  ;;  %s3131_s8 = int_to_ptr.vmem [resolvable:$false] %s3130_s8 }
  0xdf   : > { %s3132_s10 = scalar_lea.vmem %s3131_s8, 32  ;;  %p3133_p2 = scmp.lt.s32.totalorder %s3867_s23, %s3131_s8 }
  0xe0   : > { %p3128_p4 = pnand %p3126_p12, %p3694_p9  ;;  %p3134_p0 = scmp.lt.s32.totalorder %s3132_s10, %s3125_s22 }
  0xe2   : > { %p3129_p6 = pneg %p3128_p4  ;;  %p3135_p5 = por %p3134_p0, %p3133_p2 }
  0xe4   : > { %p3136_p8 = pnand %p3135_p5, %p3129_p6 }
  0xe6   : > { %3139 = shalt.err (!%p3136_p8)
}
  0xe7   : > { %2784 = dma.hbm_to_vmem [thread:$0]  (!%p4425_p13), %s3864_s26, 16, %s3867_s23, %s4390_s15  }
  0xe8   : > { %s3140_s3 = scalar_lea.hbm %s4343_s0, 256  ;;  %p4427_p11 = scmp.ne.s32.totalorder %s4417_s19, 0 }
  0xe9   : > { %p3141_p7 = scmp.ne.s32.totalorder %s4343_s0, %s3140_s3  ;;  %p3147_p10 = scmp.lt.u32.totalorder %s3140_s3, %s4343_s0 }
  0xeb   : > { %p3143_p1 = pnand %p3141_p7, %p4427_p11 }
  0xed   : > { %p3144_p3 = pneg %p3143_p1 }
  0xef   : > { %p3149_p12 = pnand %p3147_p10, %p3144_p3 }
  0xf1   : > { %3152 = shalt.err (!%p3149_p12)
}
  0xf2   : > { %s3153_s8 = scalar_lea.vmem %s460_s13, 256  ;;  %p3161_p0 = scmp.lt.s32.totalorder %s460_s13, %s460_s13 }
  0xf3   : > { %p3154_p4 = scmp.ne.s32.totalorder %s460_s13, %s3153_s8  ;;  %p3162_p5 = scmp.lt.s32.totalorder %s3153_s8, %s3153_s8 }
  0xf5   : > { %p3156_p6 = pnand %p3154_p4, %p4427_p11  ;;  %p3163_p8 = por %p3162_p5, %p3161_p0 }
  0xf7   : > { %p3157_p2 = pneg %p3156_p6 }
  0xf9   : > { %p3164_p13 = pnand %p3163_p8, %p3157_p2 }
  0xfb   : > { %3167 = shalt.err (!%p3164_p13)
}
  0xfc   : > { %s3482_s26 = smov 128   ;;  %s3483_s23 = smov 8  }
  0xfd   : > { %p4428_p7 = scmp.ne.s32.totalorder %s4414_s17, 0  ;;  %s3484_s12 = smov [#allocation26]  }
  0xfe   : > { %s486_s3 = sshll.u32 %s3484_s12, 4  ;;  %s2697_s28 = smul.u32 3, %s3639_s18  ;;  %s487_s3 = int_to_ptr.vmem [resolvable:$true] %s486_s3 }
  0xff   : > { %2744 = dma.hbm_to_vmem [thread:$0]  (!%p4428_p7), %s4343_s0, 256, %s460_s13, [#allocation4], %s3482_s26, %s3482_s26, %s3483_s23  }
 0x100   : > { %s2698_s30 = smul.u32 48, %s3468_s21  ;;  %s3168_s8 = scalar_lea.hbm %s4357_s14, 16 }
 0x101   : > { %p3169_p13 = scmp.ne.s32.totalorder %s4357_s14, %s3168_s8  ;;  %p3175_p10 = scmp.lt.u32.totalorder %s3168_s8, %s4357_s14 }
 0x103   : > { %p3171_p1 = pnand %p3169_p13, %p4427_p11 }
 0x105   : > { %p3172_p3 = pneg %p3171_p1 }
 0x107   : > { %p3177_p12 = pnand %p3175_p10, %p3172_p3 }
 0x109   : > { %3180 = shalt.err (!%p3177_p12)
}
 0x10a   : > { %s3181_s13 = scalar_lea.vmem %s487_s3, 16  ;;  %s3188_s21 = scalar_lea.vmem %s487_s3, 32 }
 0x10b   : > { %p3182_p4 = scmp.ne.s32.totalorder %s487_s3, %s3181_s13  ;;  %p3189_p0 = scmp.lt.s32.totalorder %s487_s3, %s487_s3 }
 0x10c   : > { %p3190_p5 = scmp.lt.s32.totalorder %s3188_s21, %s3181_s13 }
 0x10d   : > { %p3184_p6 = pnand %p3182_p4, %p4427_p11 }
 0x10e   : > { %p3191_p8 = por %p3190_p5, %p3189_p0 }
 0x10f   : > { %p3185_p2 = pneg %p3184_p6 }
 0x111   : > { %p3192_p9 = pnand %p3191_p8, %p3185_p2 }
 0x113   : > { %3195 = shalt.err (!%p3192_p9)
}
 0x114   : > { %2750 = dma.hbm_to_vmem [thread:$0]  (!%p4428_p7), %s4357_s14, 16, %s487_s3, [#allocation25]  }
 0x115   : > { %s3937_s19 = scalar_lea.hbm %s4345_s2, %s2698_s30  ;;  %s522_s26 = scalar_lea.vmem [#allocation8], %s2697_s28 }
 0x116   : > { %s530_s23 = sshll.u32 %s522_s26, 4  ;;  %s3943_s1 = scalar_lea.hbm %s4347_s4, %s3732_s20  ;;  %s531_s23 = int_to_ptr.vmem [resolvable:$true] %s530_s23 }
 0x117   : > { %s3196_s12 = scalar_lea.hbm %s3937_s19, 48  ;;  %p4429_p11 = scmp.ne.s32.totalorder %s4420_s16, 0 }
 0x118   : > { %p3197_p9 = scmp.ne.s32.totalorder %s3937_s19, %s3196_s12  ;;  %s3201_s22 = scalar_lea.hbm %s4345_s2, 96 }
 0x119   : > { %p3202_p1 = scmp.lt.u32.totalorder %s3937_s19, %s4345_s2  ;;  %p3203_p3 = scmp.lt.u32.totalorder %s3201_s22, %s3196_s12 }
 0x11a   : > { %p3199_p7 = pnand %p3197_p9, %p4429_p11  ;;  %p3205_p12 = scmp.lt.u32.totalorder %s3196_s12, %s3937_s19 }
 0x11b   : > { %p3204_p10 = por %p3203_p3, %p3202_p1 }
 0x11c   : > { %p3200_p13 = pneg %p3199_p7 }
 0x11d   : > { %p3206_p4 = por %p3205_p12, %p3204_p10 }
 0x11f   : > { %p3207_p6 = pnand %p3206_p4, %p3200_p13 }
 0x121   : > { %3210 = shalt.err (!%p3207_p6)
}
 0x122   : > { %s3211_s28 = scalar_lea.vmem %s531_s23, 48  ;;  %s3485_s13 = smov [#allocation8]  }
 0x123   : > { %p3212_p2 = scmp.ne.s32.totalorder %s531_s23, %s3211_s28  ;;  %s3216_s21 = sshll.u32 %s3485_s13, 4  ;;  %s3217_s21 = int_to_ptr.vmem [resolvable:$false] %s3216_s21 }
 0x124   : > { %s3218_s6 = scalar_lea.vmem %s3217_s21, 96  ;;  %p3219_p8 = scmp.lt.s32.totalorder %s531_s23, %s3217_s21 }
 0x125   : > { %p3214_p0 = pnand %p3212_p2, %p4429_p11  ;;  %p3220_p9 = scmp.lt.s32.totalorder %s3218_s6, %s3211_s28 }
 0x127   : > { %p3215_p5 = pneg %p3214_p0  ;;  %p3221_p7 = por %p3220_p9, %p3219_p8 }
 0x129   : > { %p3222_p1 = pnand %p3221_p7, %p3215_p5 }
 0x12b   : > { %3225 = shalt.err (!%p3222_p1)
}
 0x12c   : > { %p4430_p3 = scmp.ne.s32.totalorder %s4415_s25, 0  ;;  %s4431_s15 = scalar_lea.sflag [#allocation7], %s3642_s24 }
 0x12d   : > { %s561_s5 = scalar_lea.vmem [#allocation11], %s3639_s18  ;;  %s4432_s17 = sld [smem:[#allocation47_spill]] }
 0x12e   : > { %2757 = dma.hbm_to_vmem [thread:$0]  (!%p4430_p3), %s3937_s19, 48, %s531_s23, %s4431_s15  }
 0x12f   : > { %s568_s29 = sshll.u32 %s561_s5, 4  ;;  %s3226_s3 = scalar_lea.hbm %s3943_s1, 16  ;;  %s569_s29 = int_to_ptr.vmem [resolvable:$true] %s568_s29 }
 0x130   : > { %p3227_p13 = scmp.ne.s32.totalorder %s3943_s1, %s3226_s3  ;;  %s3231_s27 = scalar_lea.hbm %s4347_s4, 32 }
 0x131   : > { %p3232_p4 = scmp.lt.u32.totalorder %s3943_s1, %s4347_s4  ;;  %p3233_p6 = scmp.lt.u32.totalorder %s3231_s27, %s3226_s3 }
 0x132   : > { %p3229_p10 = pnand %p3227_p13, %p4429_p11  ;;  %p3235_p0 = scmp.lt.u32.totalorder %s3226_s3, %s3943_s1 }
 0x133   : > { %s3969_s12 = scalar_lea.hbm %s4432_s17, %s3732_s20  ;;  %p3234_p2 = por %p3233_p6, %p3232_p4 }
 0x134   : > { %p3230_p12 = pneg %p3229_p10 }
 0x135   : > { %p3236_p5 = por %p3235_p0, %p3234_p2 }
 0x137   : > { %p3237_p8 = pnand %p3236_p5, %p3230_p12 }
 0x139   : > { %3240 = shalt.err (!%p3237_p8)
}
 0x13a   : > { %s3241_s19 = scalar_lea.vmem %s569_s29, 16  ;;  %s3486_s23 = smov [#allocation11]  }
 0x13b   : > { %p3242_p9 = scmp.ne.s32.totalorder %s569_s29, %s3241_s19  ;;  %s3246_s13 = sshll.u32 %s3486_s23, 4  ;;  %s3247_s13 = int_to_ptr.vmem [resolvable:$false] %s3246_s13 }
 0x13c   : > { %s3248_s21 = scalar_lea.vmem %s3247_s13, 32  ;;  %p3249_p13 = scmp.lt.s32.totalorder %s569_s29, %s3247_s13 }
 0x13d   : > { %p3244_p7 = pnand %p3242_p9, %p4429_p11  ;;  %p3250_p10 = scmp.lt.s32.totalorder %s3248_s21, %s3241_s19 }
 0x13f   : > { %p3245_p1 = pneg %p3244_p7  ;;  %p3251_p3 = por %p3250_p10, %p3249_p13 }
 0x141   : > { %p3252_p4 = pnand %p3251_p3, %p3245_p1 }
 0x143   : > { %3255 = shalt.err (!%p3252_p4)
}
 0x144   : > { %p4433_p6 = scmp.ne.s32.totalorder %s4415_s25, 0  ;;  %s4434_s6 = scalar_lea.sflag [#allocation10], %s3642_s24 }
 0x145   : > { %s595_s15 = scalar_lea.vmem [#allocation14], %s3639_s18  ;;  %s4435_s3 = sld [smem:[#allocation48_spill]] }
 0x146   : > { %2763 = dma.hbm_to_vmem [thread:$0]  (!%p4433_p6), %s3943_s1, 16, %s569_s29, %s4434_s6  }
 0x147   : > { %s602_s5 = sshll.u32 %s595_s15, 4  ;;  %s3256_s22 = scalar_lea.hbm %s3969_s12, 16  ;;  %s603_s5 = int_to_ptr.vmem [resolvable:$true] %s602_s5 }
 0x148   : > { %p3257_p3 = scmp.ne.s32.totalorder %s3969_s12, %s3256_s22  ;;  %s3261_s28 = scalar_lea.hbm %s4432_s17, 32 }
 0x149   : > { %p3262_p0 = scmp.lt.u32.totalorder %s3969_s12, %s4432_s17  ;;  %p3263_p5 = scmp.lt.u32.totalorder %s3261_s28, %s3256_s22 }
 0x14a   : > { %p3259_p12 = pnand %p3257_p3, %p4429_p11  ;;  %p3265_p9 = scmp.lt.u32.totalorder %s3256_s22, %s3969_s12 }
 0x14b   : > { %s3995_s30 = scalar_lea.hbm %s4435_s3, %s3732_s20  ;;  %p3264_p8 = por %p3263_p5, %p3262_p0 }
 0x14c   : > { %p3260_p2 = pneg %p3259_p12 }
 0x14d   : > { %p3266_p7 = por %p3265_p9, %p3264_p8 }
 0x14f   : > { %p3267_p1 = pnand %p3266_p7, %p3260_p2 }
 0x151   : > { %3270 = shalt.err (!%p3267_p1)
}
 0x152   : > { %s3271_s1 = scalar_lea.vmem %s603_s5, 16  ;;  %s3487_s29 = smov [#allocation14]  }
 0x153   : > { %p3272_p13 = scmp.ne.s32.totalorder %s603_s5, %s3271_s1  ;;  %s3276_s13 = sshll.u32 %s3487_s29, 4  ;;  %s3277_s13 = int_to_ptr.vmem [resolvable:$false] %s3276_s13 }
 0x154   : > { %s3278_s21 = scalar_lea.vmem %s3277_s13, 32  ;;  %p3279_p3 = scmp.lt.s32.totalorder %s603_s5, %s3277_s13 }
 0x155   : > { %p3274_p10 = pnand %p3272_p13, %p4429_p11  ;;  %p3280_p12 = scmp.lt.s32.totalorder %s3278_s21, %s3271_s1 }
 0x157   : > { %p3275_p4 = pneg %p3274_p10  ;;  %p3281_p6 = por %p3280_p12, %p3279_p3 }
 0x159   : > { %p3282_p0 = pnand %p3281_p6, %p3275_p4 }
 0x15b   : > { %3285 = shalt.err (!%p3282_p0)
}
 0x15c   : > { %p4436_p5 = scmp.ne.s32.totalorder %s4415_s25, 0  ;;  %s4437_s6 = scalar_lea.sflag [#allocation13], %s3642_s24 }
 0x15d   : > { %s633_s15 = scalar_lea.vmem [#allocation17], %s3639_s18  ;;  %s4438_s27 = sld [smem:[#allocation49_spill]] }
 0x15e   : > { %2769 = dma.hbm_to_vmem [thread:$0]  (!%p4436_p5), %s3969_s12, 16, %s603_s5, %s4437_s6  }
 0x15f   : > { %s640_s26 = sshll.u32 %s633_s15, 4  ;;  %s3286_s28 = scalar_lea.hbm %s3995_s30, 16  ;;  %s641_s26 = int_to_ptr.vmem [resolvable:$true] %s640_s26 }
 0x160   : > { %p3287_p6 = scmp.ne.s32.totalorder %s3995_s30, %s3286_s28  ;;  %s3291_s1 = scalar_lea.hbm %s4435_s3, 32 }
 0x161   : > { %p3292_p9 = scmp.lt.u32.totalorder %s3995_s30, %s4435_s3  ;;  %p3293_p7 = scmp.lt.u32.totalorder %s3291_s1, %s3286_s28 }
 0x162   : > { %p3289_p2 = pnand %p3287_p6, %p4429_p11  ;;  %p3295_p13 = scmp.lt.u32.totalorder %s3286_s28, %s3995_s30 }
 0x163   : > { %s4021_s8 = scalar_lea.hbm %s4438_s27, %s3732_s20  ;;  %p3294_p1 = por %p3293_p7, %p3292_p9 }
 0x164   : > { %p3290_p8 = pneg %p3289_p2 }
 0x165   : > { %p3296_p10 = por %p3295_p13, %p3294_p1 }
 0x167   : > { %p3297_p4 = pnand %p3296_p10, %p3290_p8 }
 0x169   : > { %3300 = shalt.err (!%p3297_p4)
}
 0x16a   : > { %s3301_s12 = scalar_lea.vmem %s641_s26, 16  ;;  %s3488_s5 = smov [#allocation17]  }
 0x16b   : > { %p3302_p3 = scmp.ne.s32.totalorder %s641_s26, %s3301_s12  ;;  %s3306_s21 = sshll.u32 %s3488_s5, 4  ;;  %s3307_s21 = int_to_ptr.vmem [resolvable:$false] %s3306_s21 }
 0x16c   : > { %s3308_s6 = scalar_lea.vmem %s3307_s21, 32  ;;  %p3309_p6 = scmp.lt.s32.totalorder %s641_s26, %s3307_s21 }
 0x16d   : > { %p3304_p12 = pnand %p3302_p3, %p4429_p11  ;;  %p3310_p2 = scmp.lt.s32.totalorder %s3308_s6, %s3301_s12 }
 0x16f   : > { %p3305_p0 = pneg %p3304_p12  ;;  %p3311_p5 = por %p3310_p2, %p3309_p6 }
 0x171   : > { %p3312_p7 = pnand %p3311_p5, %p3305_p0 }
 0x173   : > { %3315 = shalt.err (!%p3312_p7)
}
 0x174   : > { %p4439_p9 = scmp.ne.s32.totalorder %s4415_s25, 0  ;;  %s4440_s15 = scalar_lea.sflag [#allocation16], %s3642_s24 }
 0x175   : > { %s671_s10 = scalar_lea.vmem [#allocation20], %s3639_s18  ;;  %s4441_s23 = sld [smem:[#allocation50_spill]] }
 0x176   : > { %2775 = dma.hbm_to_vmem [thread:$0]  (!%p4439_p9), %s3995_s30, 16, %s641_s26, %s4440_s15  }
 0x177   : > { %s678_s22 = sshll.u32 %s671_s10, 4  ;;  %s3316_s29 = scalar_lea.hbm %s4021_s8, 16  ;;  %s679_s22 = int_to_ptr.vmem [resolvable:$true] %s678_s22 }
 0x178   : > { %p3317_p5 = scmp.ne.s32.totalorder %s4021_s8, %s3316_s29  ;;  %s3321_s5 = scalar_lea.hbm %s4438_s27, 32 }
 0x179   : > { %p3322_p13 = scmp.lt.u32.totalorder %s4021_s8, %s4438_s27  ;;  %p3323_p10 = scmp.lt.u32.totalorder %s3321_s5, %s3316_s29 }
 0x17a   : > { %p3319_p8 = pnand %p3317_p5, %p4429_p11  ;;  %p3325_p3 = scmp.lt.u32.totalorder %s3316_s29, %s4021_s8 }
 0x17b   : > { %s4047_s1 = scalar_lea.hbm %s4441_s23, %s3732_s20  ;;  %p3324_p4 = por %p3323_p10, %p3322_p13 }
 0x17c   : > { %p3320_p1 = pneg %p3319_p8 }
 0x17d   : > { %p3326_p12 = por %p3325_p3, %p3324_p4 }
 0x17f   : > { %p3327_p0 = pnand %p3326_p12, %p3320_p1 }
 0x181   : > { %3330 = shalt.err (!%p3327_p0)
}
 0x182   : > { %s3331_s20 = scalar_lea.vmem %s679_s22, 16  ;;  %s3489_s30 = smov [#allocation20]  }
 0x183   : > { %p3332_p6 = scmp.ne.s32.totalorder %s679_s22, %s3331_s20  ;;  %s3336_s26 = sshll.u32 %s3489_s30, 4  ;;  %s3337_s26 = int_to_ptr.vmem [resolvable:$false] %s3336_s26 }
 0x184   : > { %s3338_s15 = scalar_lea.vmem %s3337_s26, 32  ;;  %p3339_p5 = scmp.lt.s32.totalorder %s679_s22, %s3337_s26 }
 0x185   : > { %p3334_p2 = pnand %p3332_p6, %p4429_p11  ;;  %p3340_p8 = scmp.lt.s32.totalorder %s3338_s15, %s3331_s20 }
 0x187   : > { %p3335_p7 = pneg %p3334_p2  ;;  %p3341_p9 = por %p3340_p8, %p3339_p5 }
 0x189   : > { %p3342_p10 = pnand %p3341_p9, %p3335_p7 }
 0x18b   : > { %3345 = shalt.err (!%p3342_p10)
}
 0x18c   : > { %p4442_p13 = scmp.ne.s32.totalorder %s4415_s25, 0  ;;  %s4443_s10 = scalar_lea.sflag [#allocation19], %s3642_s24 }
 0x18d   : > { %s705_s28 = scalar_lea.vmem [#allocation23], %s3639_s18  ;;  %s3346_s29 = scalar_lea.hbm %s4047_s1, 16 }
 0x18e   : > { %2781 = dma.hbm_to_vmem [thread:$0]  (!%p4442_p13), %s4021_s8, 16, %s679_s22, %s4443_s10  }
 0x18f   : > { %s712_s19 = sshll.u32 %s705_s28, 4  ;;  %p3347_p1 = scmp.ne.s32.totalorder %s4047_s1, %s3346_s29  ;;  %s713_s19 = int_to_ptr.vmem [resolvable:$true] %s712_s19 }
 0x190   : > { %s3351_s5 = scalar_lea.hbm %s4441_s23, 32  ;;  %p3352_p3 = scmp.lt.u32.totalorder %s4047_s1, %s4441_s23 }
 0x191   : > { %p3349_p9 = pnand %p3347_p1, %p4429_p11  ;;  %p3353_p12 = scmp.lt.u32.totalorder %s3351_s5, %s3346_s29 }
 0x192   : > { %p3355_p6 = scmp.lt.u32.totalorder %s3346_s29, %s4047_s1 }
 0x193   : > { %p3350_p4 = pneg %p3349_p9  ;;  %p3354_p0 = por %p3353_p12, %p3352_p3 }
 0x195   : > { %p3356_p2 = por %p3355_p6, %p3354_p0 }
 0x197   : > { %p3357_p7 = pnand %p3356_p2, %p3350_p4 }
 0x199   : > { %3360 = shalt.err (!%p3357_p7)
}
 0x19a   : > { %s3361_s18 = scalar_lea.vmem %s713_s19, 16  ;;  %s3490_s8 = smov [#allocation23]  }
 0x19b   : > { %p3362_p5 = scmp.ne.s32.totalorder %s713_s19, %s3361_s18  ;;  %s3366_s22 = sshll.u32 %s3490_s8, 4  ;;  %s3367_s22 = int_to_ptr.vmem [resolvable:$false] %s3366_s22 }
 0x19c   : > { %s3368_s20 = scalar_lea.vmem %s3367_s22, 32  ;;  %p3369_p1 = scmp.lt.s32.totalorder %s713_s19, %s3367_s22 }
 0x19d   : > { %p3364_p8 = pnand %p3362_p5, %p4429_p11  ;;  %p3370_p9 = scmp.lt.s32.totalorder %s3368_s20, %s3361_s18 }
 0x19f   : > { %p3365_p10 = pneg %p3364_p8  ;;  %p3371_p13 = por %p3370_p9, %p3369_p1 }
 0x1a1   : > { %p3372_p3 = pnand %p3371_p13, %p3365_p10 }
 0x1a3   : > { %3375 = shalt.err (!%p3372_p3)
}
 0x1a4   : > { %p4444_p12 = scmp.ne.s32.totalorder %s4415_s25, 0  ;;  %s4445_s30 = scalar_lea.sflag [#allocation22], %s3642_s24 }
 0x1a5   : > { %s4446_s26 = sld [smem:[#allocation43_spill]] }
 0x1a6   : > { %2787 = dma.hbm_to_vmem [thread:$0]  (!%p4444_p12), %s4047_s1, 16, %s713_s19, %s4445_s30  }
 0x1ab   : > { %p4447_p4 = scmp.ne.s32.totalorder %s4446_s26, 0 }
 0x1ac   : > { %s4448_s16 = sld [smem:[#allocation39_spill]] (!%p4447_p4) }
 0x1ad   : > { %721 = sbr.rel (%p4447_p4) target bundleno = 3058 (0xbf2), region = 80 }
 0x1b2   : > { %p4449_p11 = scmp.eq.s32.totalorder (!%p4447_p4), %s4448_s16, 0 }
 0x1b4   : > { %3419 = dma.done.wait (%p4449_p11), [#allocation4], 256   ;;  %p4450_p0 = pmov %p4449_p11 }
 0x1b5   : > { %s4451_s15 = sld [smem:[#allocation37_spill]]  ;;  %s4452_s10 = sld [smem:[#allocation42_spill]] }
 0x1b6   : > { %3421 = vsyncadd (%p4450_p0), [#allocation4], 4294967040  ;;  %s4095_s28 = sand.u32 1, %s4448_s16  }
 0x1b7   : > { %s728_s1 = scalar_lea.sflag [#allocation7], %s4095_s28 }
 0x1bb   : > { %s4098_s25 = sand.u32 1, %s4451_s15   ;;  %p4453_p13 = scmp.ne.s32.totalorder %s4452_s10, 0 }
 0x1bc   : > { %s2699_s24 = smul.u32 192, %s4098_s25 }
 0x1be   : > { %s4102_s19 = scalar_lea.vmem [#allocation6], %s2699_s24 }
 0x1bf   : > { %3423 = dma.done.wait (%p4453_p13), %s728_s1, 3120  }
 0x1c0   : > { %3425 = vsyncadd (%p4453_p13), %s728_s1, 4294964176  ;;  %s2700_s29 = smul.u32 3, %s4098_s25  ;;  %s2442_s13 = sshll.u32 %s4098_s25, 6 }
 0x1c1   : > { %s746_s5 = scalar_lea.sflag [#allocation10], %s4095_s28  ;;  %s4113_s21 = scalar_lea.vmem [#allocation9], %s2442_s13 }
 0x1c2   : > { %s4110_s12 = scalar_lea.vmem [#allocation8], %s2700_s29 }
 0x1c3   : > { %3427 = dma.done.wait (%p4453_p13), %s746_s5, 1040  }
 0x1c4   : > { %3429 = vsyncadd (%p4453_p13), %s746_s5, 4294966256  ;;  %s757_s6 = scalar_lea.vmem [#allocation11], %s4098_s25  ;;  %s763_s18 = scalar_lea.sflag [#allocation13], %s4095_s28 }
 0x1c5   : > { %s765_s8 = scalar_lea.vmem [#allocation12], %s4098_s25 }
 0x1c6   : > { %3431 = dma.done.wait (%p4453_p13), %s763_s18, 32  }
 0x1c7   : > { %3433 = vsyncadd (%p4453_p13), %s763_s18, 4294967264  ;;  %s773_s22 = scalar_lea.vmem [#allocation14], %s4098_s25  ;;  %s779_s20 = scalar_lea.sflag [#allocation16], %s4095_s28 }
 0x1c8   : > { %s4128_s30 = scalar_lea.vmem [#allocation15], %s2442_s13 }
 0x1c9   : > { %3435 = dma.done.wait (%p4453_p13), %s779_s20, 1040  }
 0x1ca   : > { %3437 = vsyncadd (%p4453_p13), %s779_s20, 4294966256  ;;  %s790_s26 = scalar_lea.vmem [#allocation17], %s4098_s25  ;;  %s796_s15 = scalar_lea.sflag [#allocation19], %s4095_s28 }
 0x1cb   : > { %s4136_s24 = scalar_lea.vmem [#allocation18], %s2442_s13 }
 0x1cc   : > { %3439 = dma.done.wait (%p4453_p13), %s796_s15, 1040  }
 0x1cd   : > { %3441 = vsyncadd (%p4453_p13), %s796_s15, 4294966256  ;;  %s807_s1 = scalar_lea.vmem [#allocation20], %s4098_s25  ;;  %s813_s29 = scalar_lea.sflag [#allocation22], %s4095_s28 }
 0x1ce   : > { %s815_s5 = scalar_lea.vmem [#allocation21], %s4098_s25 }
 0x1cf   : > { %3443 = dma.done.wait (%p4453_p13), %s813_s29, 32  }
 0x1d0   : > { %3445 = vsyncadd (%p4453_p13), %s813_s29, 4294967264  ;;  %s823_s13 = scalar_lea.vmem [#allocation23], %s4098_s25  ;;  %p4454_p6 = pmov %p4450_p0 }
 0x1d1   : > { %p4455_p2 = pmov %p4450_p0 }
 0x1d2   : > { %3447 = dma.done.wait (%p4454_p6), [#allocation25], 1040  }
 0x1d3   : > { %3449 = vsyncadd (%p4455_p2), [#allocation25], 4294966256  ;;  %p4456_p7 = scmp.ne.s32.totalorder %s4448_s16, 0 }
 0x1d4   : > { %v926_v0 = vld [vmem:[#allocation3] sm:$0xff] (!%p4456_p7)  ;;  %v927_v1 = vld [vmem:[#allocation3 + $0x8] sm:$0xff] (!%p4456_p7) }
 0x1d5   : > { %925 = sbr.rel (%p4456_p7) target bundleno = 476 (0x1dc), region = 144  ;;  %928 = vst [vmem:[#allocation2] sm:$0xff] (!%p4456_p7), %v926_v0  ;;  %929 = vst [vmem:[#allocation2 + $0x8] sm:$0xff] (!%p4456_p7), %v927_v1 }
 0x1dc PF: > { %v2844_v2 = vld [vmem:[%s4102_s19 + $0x4] ss:$12 sps:$4 sm:$0xff]   ;;  %v2846_v3 = vld [vmem:[%s4102_s19] ss:$12 sps:$4 sm:$0xff]   ;;  %v3491_v4 = vmov 0   ;;  %v3492_v5 = vmov 0.0   ;;  %v932_v31 = vlaneseq }
 0x1dd   : > { %1145 = vmatprep.mubr.bf16.mxu0 %v3491_v4  ;;  %2575 = vmatprep.subr.bf16.mxu1 %v3492_v5  ;;  %v2847_v6 = vld [vmem:[%s4102_s19 + $0x1c] ss:$12 sps:$4 sm:$0xff]   ;;  %vm3493_vm0 = vmmov 0   ;;  %v2849_v7 = vld [vmem:[%s4102_s19 + $0x18] ss:$12 sps:$4 sm:$0xff]   ;;  %vm1337_vm1 = vcmask 64512  }
 0x1de   : > { %1113 = vmatprep.subr.bf16.mxu0 %v2844_v2  ;;  %2591 = vmatprep.mubr.msk.bf16.mxu1 %vm3493_vm0, %v3492_v5  ;;  %v2850_v8 = vld [vmem:[%s4102_s19 + $0x34] ss:$12 sps:$4 sm:$0xff]   ;;  %v2852_v9 = vld [vmem:[%s4102_s19 + $0x30] ss:$12 sps:$4 sm:$0xff]   ;;  %v2853_v10 = vld [vmem:[%s4102_s19 + $0x4c] ss:$12 sps:$4 sm:$0xff]  }
 0x1df   : > { %1114 = vmatpush1.bf16.msra.mxu0 %v2846_v3  ;;  %v2855_v11 = vld [vmem:[%s4102_s19 + $0x48] ss:$12 sps:$4 sm:$0xff]   ;;  %v2856_v12 = vld [vmem:[%s4102_s19 + $0x64] ss:$12 sps:$4 sm:$0xff]   ;;  %v2869_v14 = vld [vmem:[%s4102_s19 + $0x20] ss:$12 sps:$4 sm:$0xff]  }
 0x1e0   : > { %1115 = vmatprep.subr.bf16.mxu0 %v2847_v6  ;;  %v2868_v13 = vld [vmem:[%s4102_s19 + $0x8] ss:$12 sps:$4 sm:$0xff]   ;;  %v2858_v15 = vld [vmem:[%s4102_s19 + $0x60] ss:$12 sps:$4 sm:$0xff]   ;;  %v2870_v17 = vld [vmem:[%s4102_s19 + $0x38] ss:$12 sps:$4 sm:$0xff]  }
 0x1e1   : > { %2576 = vmatpush3.bf16.msra.mxu1 %v2868_v13  ;;  %v2859_v16 = vld [vmem:[%s4102_s19 + $0x7c] ss:$12 sps:$4 sm:$0xff]   ;;  %v2861_v18 = vld [vmem:[%s4102_s19 + $0x78] ss:$12 sps:$4 sm:$0xff]   ;;  %v2862_v19 = vld [vmem:[%s4102_s19 + $0x94] ss:$12 sps:$4 sm:$0xff]  }
 0x1e2   : > { %2577 = vmatprep.subr.bf16.mxu1 %v3492_v5  ;;  %v2871_v20 = vld [vmem:[%s4102_s19 + $0x50] ss:$12 sps:$4 sm:$0xff]   ;;  %v2865_v22 = vld [vmem:[%s4102_s19 + $0xac] ss:$12 sps:$4 sm:$0xff]   ;;  %v2872_v23 = vld [vmem:[%s4102_s19 + $0x68] ss:$12 sps:$4 sm:$0xff]  }
 0x1e3   : > { %1116 = vmatpush1.bf16.msra.mxu0 %v2849_v7  ;;  %v2864_v21 = vld [vmem:[%s4102_s19 + $0x90] ss:$12 sps:$4 sm:$0xff]   ;;  %v2867_v24 = vld [vmem:[%s4102_s19 + $0xa8] ss:$12 sps:$4 sm:$0xff]   ;;  %v4183_v25 = vld [vmem:[#allocation2] sm:$0xff]  ;;  %v971_v32 = vshrl.u32 %v932_v31, 7 }
 0x1e4   : > { %1117 = vmatprep.subr.bf16.mxu0 %v2850_v8  ;;  %v4185_v26 = vld [vmem:[#allocation2 + $0x8] sm:$0xff]  ;;  %v2874_v29 = vld [vmem:[%s4102_s19 + $0x98] ss:$12 sps:$4 sm:$0xff]   ;;  %v2875_v30 = vld [vmem:[%s4102_s19 + $0xb0] ss:$12 sps:$4 sm:$0xff]   ;;  %s4457_s16 = sld [smem:[#allocation39_spill]] }
 0x1e5   : > { %2578 = vmatpush3.bf16.msra.mxu1 %v2869_v14  ;;  %v2873_v27 = vld [vmem:[%s4102_s19 + $0x80] ss:$12 sps:$4 sm:$0xff]   ;;  %v935_v28 = vpack.c.bf16 %v4185_v26, %v4183_v25  ;;  %v976_v33 = vsub.s32 1, %v971_v32  ;;  %v972_v35 = vsub.s32 0, %v971_v32  ;;  %v980_v43 = vsub.s32 2, %v971_v32 }
 0x1e6   : > { %2579 = vmatprep.subr.bf16.mxu1 %v3492_v5  ;;  %v968_v34 = vld [vmem:[%s4110_s12] sm:$0x7]  ;;  %v2876_v7 = vld [vmem:[%s4113_s21] sm:$0xff]   ;;  %v2877_v8 = vld [vmem:[%s4113_s21 + $0x8] sm:$0xff]  }
 0x1e7   : > { %1118 = vmatpush1.bf16.msra.mxu0 %v2852_v9  ;;  %v977_v36 = vrot.slane %v968_v34, %v976_v33  ;;  %v973_v38 = vrot.slane %v968_v34, %v972_v35  ;;  %v981_v46 = vrot.slane %v968_v34, %v980_v43  ;;  %v2878_v9 = vld [vmem:[%s4113_s21 + $0x10] sm:$0xff]  }
 0x1e8   : > { %1119 = vmatprep.subr.bf16.mxu0 %v2853_v10  ;;  %v2879_v10 = vld [vmem:[%s4113_s21 + $0x18] sm:$0xff]  }
 0x1e9   : > { %2580 = vmatpush3.bf16.msra.mxu1 %v2870_v17 }
 0x1ea   : > { %2581 = vmatprep.subr.bf16.mxu1 %v3492_v5  ;;  %p2505_p5 = scmp.ne.s32.totalorder %s4457_s16, 1 }
 0x1eb   : > { %1120 = vmatpush1.bf16.msra.mxu0 %v2855_v11  ;;  %v2880_v11 = vld [vmem:[%s4113_s21 + $0x20] sm:$0xff]   ;;  %vm3495_vm5 = vmmov (!%p2505_p5), 0   ;;  %vm2021_vm6 = vcmask (!%p2505_p5), 1041409  }
 0x1ec   : > { %1121 = vmatprep.subr.bf16.mxu0 %v2856_v12  ;;  %v2881_v12 = vld [vmem:[%s4113_s21 + $0x28] sm:$0xff]  }
 0x1ed   : > { %2582 = vmatpush3.bf16.msra.mxu1 %v2871_v20  ;;  %v2883_v20 = vld [vmem:[%s4113_s21 + $0x38] sm:$0xff]  }
 0x1ee   : > { %2583 = vmatprep.subr.bf16.mxu1 %v3492_v5 }
 0x1ef   : > { %1122 = vmatpush1.bf16.msra.mxu0 %v2858_v15 }
 0x1f0   : > { %1123 = vmatprep.subr.bf16.mxu0 %v2859_v16 }
 0x1f1   : > { %2584 = vmatpush3.bf16.msra.mxu1 %v2872_v23 }
 0x1f2   : > { %2585 = vmatprep.subr.bf16.mxu1 %v3492_v5 }
 0x1f3   : > { %1124 = vmatpush1.bf16.msra.mxu0 %v2861_v18 }
 0x1f4   : > { %1125 = vmatprep.subr.bf16.mxu0 %v2862_v19  ;;  %v2882_v19 = vld [vmem:[%s4113_s21 + $0x30] sm:$0xff]  }
 0x1f5   : > { %2586 = vmatpush3.bf16.msra.mxu1 %v2873_v27 }
 0x1f6   : > { %2587 = vmatprep.subr.bf16.mxu1 %v3492_v5 }
 0x1f7   : > { %1126 = vmatpush1.bf16.msra.mxu0 %v2864_v21 }
 0x1f8   : > { %1127 = vmatprep.subr.bf16.mxu0 %v2865_v22 }
 0x1f9   : > { %2588 = vmatpush3.bf16.msra.mxu1 %v2874_v29 }
 0x1fa   : > { %2589 = vmatprep.subr.bf16.mxu1 %v3492_v5 }
 0x1fb   : > { %1128 = vmatpush1.bf16.msra.mxu0 %v2867_v24 }
 0x1fc   : > { %2615 = vmatprep.subr.bf16.mxu0 %v3492_v5 }
 0x1fd   : > { %2590 = vmatpush3.bf16.msra.mxu1 %v2875_v30 }
 0x1fe   : > { %1146 = vmatmul.mubr.bf16.vlgmr.msra.gmra.mrb[0].mxu0 %v935_v28  ;;  %2595 = vmatprep.subr.mxu1 %v3492_v5 }
 0x1ff   : > { %2631 = vmatprep.mubr.msk.bf16.mxu0 %vm3493_vm0, %v3492_v5  ;;  %2616 = vmatpush3.bf16.msra.mxu0 %v2876_v7 }
 0x200   : > { %2592 = vmatmul.mubr.bf16.vlgmr.msra.gmra.mrb[0].mxu1 %v935_v28  ;;  %2617 = vmatprep.subr.bf16.mxu0 %v3492_v5  ;;  %v2474_v28 = vld [vmem:[%s757_s6] ss:$0 sm:$0xff] }
 0x201   : > { %2597 = vmatprep.mubr.msk.f32.mxu1 %vm3493_vm0, %v3492_v5 }
 0x203   : > { %2618 = vmatpush3.bf16.msra.mxu0 %v2877_v8  ;;  %v2892_v8 = vld [vmem:[%s4136_s24] sm:$0xff]  }
 0x204   : > { %2619 = vmatprep.subr.bf16.mxu0 %v3492_v5 }
 0x207   : > { %2620 = vmatpush3.bf16.msra.mxu0 %v2878_v9  ;;  %v2893_v9 = vld [vmem:[%s4136_s24 + $0x8] sm:$0xff]  }
 0x208   : > { %2621 = vmatprep.subr.bf16.mxu0 %v3492_v5 }
 0x20b   : > { %2622 = vmatpush3.bf16.msra.mxu0 %v2879_v10  ;;  %v2894_v10 = vld [vmem:[%s4136_s24 + $0x10] sm:$0xff]  }
 0x20c   : > { %2623 = vmatprep.subr.bf16.mxu0 %v3492_v5 }
 0x20f   : > { %2624 = vmatpush3.bf16.msra.mxu0 %v2880_v11  ;;  %v2895_v11 = vld [vmem:[%s4136_s24 + $0x18] sm:$0xff]  }
 0x210   : > { %2625 = vmatprep.subr.bf16.mxu0 %v3492_v5 }
 0x213   : > { %2626 = vmatpush3.bf16.msra.mxu0 %v2881_v12  ;;  %v2896_v12 = vld [vmem:[%s4136_s24 + $0x20] sm:$0xff]  }
 0x214   : > { %2627 = vmatprep.subr.bf16.mxu0 %v3492_v5 }
 0x217   : > { %2628 = vmatpush3.bf16.msra.mxu0 %v2882_v19 }
 0x218   : > { %2629 = vmatprep.subr.bf16.mxu0 %v3492_v5 }
 0x21b   : > { %2630 = vmatpush3.bf16.msra.mxu0 %v2883_v20 }
 0x21c   : > { %2655 = vmatprep.subr.bf16.mxu0 %v3492_v5 }
 0x2d1   : > { %v1147_v37 = vpop.f32.mrb[0].mxu0 }
 0x2d2   : > { %v1149_v39 = vpop.f32.mrb[1].mxu0  ;;  %v1148_v44 = vadd.f32 %v1147_v37, %v973_v38 }
 0x2d3   : > { %v1150_v40 = vadd.f32 %v1149_v39, %v977_v36  ;;  %v1151_v41 = vpop.f32.mrb[2].mxu0  ;;  %v1190_v48 = vpop.f32.mrb[0].mxu1  ;;  %v2885_v39 = vld [vmem:[%s4128_s30 + $0x8] sm:$0xff]  }
 0x2d4   : > { %v1153_v42 = vpop.f32.mrb[3].mxu0  ;;  %v1152_v47 = vadd.f32 %v1151_v41, %v973_v38  ;;  %v1191_v49 = vadd.f32 %v1190_v48, %v981_v46  ;;  %v2593_v50 = vpop.f32.mrb[1].mxu1  ;;  %v2884_v38 = vld [vmem:[%s4128_s30] sm:$0xff]   ;;  %v2886_v48 = vld [vmem:[%s4128_s30 + $0x10] sm:$0xff]  }
 0x2d5   : > { %2596 = vmatpush3.xpose.msra.mxu1 %v1150_v40  ;;  %v1154_v45 = vadd.f32 %v1153_v42, %v977_v36  ;;  %v1193_v51 = vpop.f32.mrb[2].mxu1  ;;  %v4249_v40 = vand.u32 127, %v932_v31  ;;  %v2888_v50 = vld [vmem:[%s4128_s30 + $0x20] sm:$0xff]  }
 0x2d6   : > { %2600 = vmatprep.subr.mxu1 %v3492_v5  ;;  %v1194_v52 = vadd.f32 %v1193_v51, %v981_v46  ;;  %v2594_v53 = vpop.f32.mrb[3].mxu1  ;;  %v2889_v51 = vld [vmem:[%s4128_s30 + $0x28] sm:$0xff]  }
 0x2d7   : > { %vm934_vm2 = vcmp.lt.s32.totalorder %v4249_v40, 32  ;;  %v2891_v53 = vld [vmem:[%s4128_s30 + $0x38] sm:$0xff]   ;;  %v2504_v40 = vld [vmem:[%s823_s13] ss:$0 sm:$0xff] }
 0x2d8   : > { %2598 = vmatmul.mubr.f32.vlgmr.msra.gmra.mrb[4].mxu1 %v1148_v44 }
 0x2d9   : > { %2601 = vmatpush3.xpose.msra.mxu1 %v1154_v45  ;;  %2602 = vmatprep.mubr.msk.f32.mxu1 %vm3493_vm0, %v3492_v5 }
 0x2da   : > { %2605 = vmatprep.subr.mxu1 %v3492_v5 }
 0x2dc   : > { %2603 = vmatmul.mubr.f32.vlgmr.msra.gmra.mrb[6].mxu1 %v1152_v47 }
 0x2dd   : > { %2607 = vmatprep.mubr.msk.f32.mxu1 %vm3493_vm0, %v3492_v5  ;;  %2606 = vmatpush3.msra.mxu1 %v1191_v49  ;;  %v2887_v49 = vld [vmem:[%s4128_s30 + $0x18] sm:$0xff]  }
 0x2de   : > { %2610 = vmatprep.subr.mxu1 %v3492_v5 }
 0x3ab   : > { %v1263_v54 = vpop.f32.mrb[4].mxu1 }
 0x3ac   : > { %v2599_v55 = vpop.f32.mrb[5].mxu1  ;;  %v1338_v56 = vsel %vm1337_vm1, %v1263_v54, -inf }
 0x3ad   : > { %1339 = vmax.xlane.f32.xlu0 %v1338_v56 }
 0x3af   : > { %v1333_v57 = vpop.f32.mrb[6].mxu1 }
 0x3b0   : > { %v2604_v58 = vpop.f32.mrb[7].mxu1  ;;  %v1341_v59 = vsel %vm1337_vm1, %v1333_v57, -inf }
 0x3b1   : > { %1342 = vmax.xlane.f32.xlu0 %v1341_v59 }
 0x43a   : > { %v1340_v60 = vpop.xlane.xlu0 %1339 }
 0x43b   : > { %v1344_v61 = vsub.f32 %v1263_v54, %v1340_v60 }
 0x43d   : > { %v1346_v62 = vmul.f32 1.442695, %v1344_v61  ;;  %v2483_v61 = vld [vmem:[%s765_s8] ss:$0 sm:$0xff] }
 0x43e   : > { %v1343_v63 = vpop.xlane.xlu0 %1342 }
 0x43f   : > { %2900 = vpow2.f32 %v1346_v62  ;;  %v1345_v0 = vsub.f32 %v1333_v57, %v1343_v63 }
 0x441   : > { %v1348_v1 = vmul.f32 1.442695, %v1345_v0 }
 0x443   : > { %2902 = vpow2.f32 %v1348_v1 }
 0x449   : > { %v2901_v2 = vpop.eup %2900 }
 0x44a   : > { %v1350_v3 = vsel %vm1337_vm1, %v2901_v2, 0.0 }
 0x44b   : > { %1351 = vadd.xlane.f32.xlu1 %v1350_v3 }
 0x44d   : > { %v2903_v4 = vpop.eup %2902 }
 0x44e   : > { %v1353_v6 = vsel %vm1337_vm1, %v2903_v4, 0.0 }
 0x44f   : > { %1354 = vadd.xlane.f32.xlu1 %v1353_v6 }
 0x4d8   : > { %v1352_v13 = vpop.xlane.xlu1 %1351 }
 0x4d9   : > { %2904 = vrcp.f32 %v1352_v13  ;;  %v2897_v13 = vld [vmem:[%s4136_s24 + $0x28] sm:$0xff]  }
 0x4dc   : > { %v1355_v14 = vpop.xlane.xlu1 %1354 }
 0x4dd   : > { %2906 = vrcp.f32 %v1355_v14  ;;  %v2898_v14 = vld [vmem:[%s4136_s24 + $0x30] sm:$0xff]  }
 0x4e3   : > { %v2905_v15 = vpop.eup %2904 }
 0x4e4   : > { %v1358_v16 = vmul.f32 %v2905_v15, %v2901_v2  ;;  %v2484_v2 = vld [vmem:[%s773_s22] ss:$0 sm:$0xff]  ;;  %v2899_v15 = vld [vmem:[%s4136_s24 + $0x38] sm:$0xff]  }
 0x4e6   : > { %2608 = vmatmul.mubr.msk.f32.vlgmr.msra.gmra.mrb[8].mxu1 %vm1337_vm1, %v1358_v16  ;;  %v2485_v16 = vld [vmem:[%s790_s26] ss:$0 sm:$0xff] }
 0x4e7   : > { %v2907_v17 = vpop.eup %2906  ;;  %2611 = vmatpush3.msra.mxu1 %v1194_v52  ;;  %2612 = vmatprep.mubr.msk.f32.mxu1 %vm3493_vm0, %v3492_v5  ;;  %v2890_v52 = vld [vmem:[%s4128_s30 + $0x30] sm:$0xff]  }
 0x4e8   : > { %v1359_v18 = vmul.f32 %v2907_v17, %v2903_v4  ;;  %2635 = vmatprep.subr.bf16.mxu1 %v3492_v5 }
 0x4ea   : > { %2613 = vmatmul.mubr.msk.f32.vlgmr.msra.gmra.mrb[10].mxu1 %vm1337_vm1, %v1359_v18 }
 0x4eb   : > { %2651 = vmatprep.mubr.msk.bf16.mxu1 %vm3493_vm0, %v3492_v5  ;;  %2636 = vmatpush3.bf16.msra.mxu1 %v2884_v38 }
 0x4ec   : > { %2637 = vmatprep.subr.bf16.mxu1 %v3492_v5 }
 0x4ef   : > { %2638 = vmatpush3.bf16.msra.mxu1 %v2885_v39 }
 0x4f0   : > { %2639 = vmatprep.subr.bf16.mxu1 %v3492_v5 }
 0x4f3   : > { %2640 = vmatpush3.bf16.msra.mxu1 %v2886_v48 }
 0x4f4   : > { %2641 = vmatprep.subr.bf16.mxu1 %v3492_v5 }
 0x4f7   : > { %2642 = vmatpush3.bf16.msra.mxu1 %v2887_v49 }
 0x4f8   : > { %2643 = vmatprep.subr.bf16.mxu1 %v3492_v5 }
 0x4fb   : > { %2644 = vmatpush3.bf16.msra.mxu1 %v2888_v50 }
 0x4fc   : > { %2645 = vmatprep.subr.bf16.mxu1 %v3492_v5 }
 0x4ff   : > { %2646 = vmatpush3.bf16.msra.mxu1 %v2889_v51 }
 0x500   : > { %2647 = vmatprep.subr.bf16.mxu1 %v3492_v5 }
 0x503   : > { %2648 = vmatpush3.bf16.msra.mxu1 %v2890_v52 }
 0x504   : > { %2649 = vmatprep.subr.bf16.mxu1 %v3492_v5 }
 0x507   : > { %2650 = vmatpush3.bf16.msra.mxu1 %v2891_v53 }
 0x5b9   : > { %v1429_v21 = vpop.f32.mrb[8].mxu1 }
 0x5ba   : > { %v2609_v22 = vpop.f32.mrb[9].mxu1 }
 0x5bd   : > { %v1502_v23 = vpop.f32.mrb[10].mxu1 }
 0x5be   : > { %v1506_v24 = vpack.c.bf16 %v1502_v23, %v1429_v21  ;;  %v2614_v27 = vpop.f32.mrb[11].mxu1 }
 0x5c0   : > { %2632 = vmatmul.mubr.bf16.vlgmr.msra.gmra.mrb[4].mxu0 %v1506_v24 }
 0x5c1   : > { %2671 = vmatprep.mubr.msk.bf16.mxu0 %vm3493_vm0, %v3492_v5  ;;  %2656 = vmatpush3.bf16.msra.mxu0 %v2892_v8 }
 0x5c2   : > { %2657 = vmatprep.subr.bf16.mxu0 %v3492_v5 }
 0x5c5   : > { %2658 = vmatpush3.bf16.msra.mxu0 %v2893_v9 }
 0x5c6   : > { %2659 = vmatprep.subr.bf16.mxu0 %v3492_v5 }
 0x5c9   : > { %2660 = vmatpush3.bf16.msra.mxu0 %v2894_v10 }
 0x5ca   : > { %2661 = vmatprep.subr.bf16.mxu0 %v3492_v5 }
 0x5cd   : > { %2662 = vmatpush3.bf16.msra.mxu0 %v2895_v11 }
 0x5ce   : > { %2663 = vmatprep.subr.bf16.mxu0 %v3492_v5 }
 0x5d1   : > { %2664 = vmatpush3.bf16.msra.mxu0 %v2896_v12 }
 0x5d2   : > { %2665 = vmatprep.subr.bf16.mxu0 %v3492_v5 }
 0x5d5   : > { %2666 = vmatpush3.bf16.msra.mxu0 %v2897_v13  ;;  %v2494_v13 = vld [vmem:[%s807_s1] ss:$0 sm:$0xff] }
 0x5d6   : > { %2667 = vmatprep.subr.bf16.mxu0 %v3492_v5 }
 0x5d9   : > { %2668 = vmatpush3.bf16.msra.mxu0 %v2898_v14 }
 0x5da   : > { %2669 = vmatprep.subr.bf16.mxu0 %v3492_v5 }
 0x5dd   : > { %2670 = vmatpush3.bf16.msra.mxu0 %v2899_v15 }
 0x693   : > { %v1612_v29 = vpop.f32.mrb[4].mxu0 }
 0x694   : > { %v1613_v30 = vadd.f32 %v2474_v28, %v1612_v29  ;;  %v2633_v32 = vpop.f32.mrb[5].mxu0 }
 0x695   : > { %v1615_v33 = vpop.f32.mrb[6].mxu0 }
 0x696   : > { %v1616_v34 = vadd.f32 %v2474_v28, %v1615_v33  ;;  %v2634_v35 = vpop.f32.mrb[7].mxu0  ;;  %v1619_v36 = vadd.f32 %v1613_v30, %v4183_v25 }
 0x698   : > { %1623 = vadd.xlane.f32.xlu0 %v1619_v36  ;;  %v1620_v37 = vadd.f32 %v1616_v34, %v4185_v26 }
 0x69a   : > { %1625 = vadd.xlane.f32.xlu1 %v1620_v37 }
 0x725   : > { %v1624_v41 = vpop.xlane.xlu0 %1623 }
 0x726   : > { %v1627_v42 = vmul.f32 0.03125, %v1624_v41 }
 0x727   : > { %v1626_v25 = vpop.xlane.xlu1 %1625 }
 0x728   : > { %v1629_v26 = vsub.f32 %v1619_v36, %v1627_v42  ;;  %v1628_v43 = vmul.f32 0.03125, %v1626_v25 }
 0x72a   : > { %v1630_v44 = vsub.f32 %v1620_v37, %v1628_v43  ;;  %v1631_v45 = vsel %vm934_vm2, %v1629_v26, 0.0 }
 0x72b   : > { %v1633_v46 = vmul.f32 %v1631_v45, %v1631_v45 }
 0x72c   : > { %v1632_v47 = vsel %vm934_vm2, %v1630_v44, 0.0 }
 0x72d   : > { %1635 = vadd.xlane.f32.xlu0 %v1633_v46  ;;  %v1634_v31 = vmul.f32 %v1632_v47, %v1632_v47 }
 0x72f   : > { %1637 = vadd.xlane.f32.xlu1 %v1634_v31 }
 0x7ba   : > { %v1636_v54 = vpop.xlane.xlu0 %1635 }
 0x7bb   : > { %v1639_v55 = vmul.f32 0.03125, %v1636_v54 }
 0x7bc   : > { %v1638_v56 = vpop.xlane.xlu1 %1637 }
 0x7bd   : > { %v1641_v57 = vadd.f32 1e-05, %v1639_v55  ;;  %v1640_v58 = vmul.f32 0.03125, %v1638_v56 }
 0x7bf   : > { %2908 = vrsqrt.f32 %v1641_v57  ;;  %v1642_v59 = vadd.f32 1e-05, %v1640_v58 }
 0x7c1   : > { %2910 = vrsqrt.f32 %v1642_v59 }
 0x7c9   : > { %v2909_v60 = vpop.eup %2908 }
 0x7ca   : > { %v1645_v62 = vmul.f32 %v2909_v60, %v1631_v45 }
 0x7cb   : > { %v2911_v63 = vpop.eup %2910 }
 0x7cc   : > { %v1646_v0 = vmul.f32 %v2911_v63, %v1632_v47  ;;  %v1653_v1 = vmul.f32 %v2483_v61, %v1645_v62 }
 0x7ce   : > { %v1654_v3 = vmul.f32 %v2483_v61, %v1646_v0  ;;  %v4271_v4 = vadd.f32 %v2484_v2, %v1653_v1 }
 0x7d0   : > { %v4273_v6 = vadd.f32 %v2484_v2, %v1654_v3 }
 0x7d2   : > { %v1663_v7 = vpack.c.bf16 %v4273_v6, %v4271_v4 }
 0x7d4   : > { %2652 = vmatmul.mubr.bf16.vlgmr.msra.gmra.mrb[12].mxu1 %v1663_v7 }
 0x8a7   : > { %v1769_v17 = vpop.f32.mrb[12].mxu1 }
 0x8a8   : > { %v1770_v18 = vadd.f32 %v2485_v16, %v1769_v17  ;;  %v2653_v19 = vpop.f32.mrb[13].mxu1 }
 0x8a9   : > { %v1772_v20 = vpop.f32.mrb[14].mxu1 }
 0x8aa   : > { %v1778_v21 = vmul.f32 0.70710677, %v1770_v18  ;;  %v1773_v22 = vadd.f32 %v2485_v16, %v1772_v20  ;;  %v2654_v23 = vpop.f32.mrb[15].mxu1  ;;  %v1776_v7 = vmul.f32 0.5, %v1770_v18 }
 0x8ac   : > { %v1780_v24 = vand.u32 2147483647, %v1778_v21  ;;  %v1779_v27 = vmul.f32 0.70710677, %v1773_v22  ;;  %vm1818_vm3 = vcmp.ge.f32.partialorder %v1778_v21, 0.0  ;;  %v1777_v8 = vmul.f32 0.5, %v1773_v22 }
 0x8ae   : > { %v1782_v28 = vmul.f32 0.3275911, %v1780_v24  ;;  %v1781_v29 = vand.u32 2147483647, %v1779_v27  ;;  %v1806_v5 = vsub.f32 0.0, %v1780_v24  ;;  %vm1819_vm4 = vcmp.ge.f32.partialorder %v1779_v27, 0.0 }
 0x8b0   : > { %v1784_v30 = vadd.f32 1.0, %v1782_v28  ;;  %v1783_v32 = vmul.f32 0.3275911, %v1781_v29  ;;  %v1807_v34 = vsub.f32 0.0, %v1781_v29  ;;  %v1808_v36 = vmul.f32 %v1806_v5, %v1780_v24 }
 0x8b2   : > { %2912 = vrcp.f32 %v1784_v30  ;;  %v1785_v33 = vadd.f32 1.0, %v1783_v32  ;;  %v1809_v41 = vmul.f32 %v1807_v34, %v1781_v29  ;;  %v1810_v42 = vmul.f32 1.442695, %v1808_v36 }
 0x8b4   : > { %2914 = vrcp.f32 %v1785_v33  ;;  %v1812_v45 = vmul.f32 1.442695, %v1809_v41 }
 0x8b5   : > { %2916 = vpow2.f32 %v1810_v42 }
 0x8b6   : > { %2918 = vpow2.f32 %v1812_v45 }
 0x8bc   : > { %v2913_v35 = vpop.eup %2912 }
 0x8bd   : > { %v1788_v37 = vmul.f32 1.0614054, %v2913_v35 }
 0x8be   : > { %v2915_v38 = vpop.eup %2914 }
 0x8bf   : > { %v1790_v39 = vadd.f32 -1.4531521, %v1788_v37  ;;  %v1789_v25 = vmul.f32 1.0614054, %v2915_v38  ;;  %v2917_v55 = vpop.eup %2916 }
 0x8c0   : > { %v2919_v59 = vpop.eup %2918 }
 0x8c1   : > { %v1792_v26 = vmul.f32 %v2913_v35, %v1790_v39  ;;  %v1791_v43 = vadd.f32 -1.4531521, %v1789_v25  ;;  %v2503_v39 = vld [vmem:[%s815_s5] ss:$0 sm:$0xff] }
 0x8c3   : > { %v1794_v44 = vadd.f32 1.4214138, %v1792_v26  ;;  %v1793_v46 = vmul.f32 %v2915_v38, %v1791_v43 }
 0x8c5   : > { %v1796_v47 = vmul.f32 %v2913_v35, %v1794_v44  ;;  %v1795_v31 = vadd.f32 1.4214138, %v1793_v46  ;;  %v2924_v46 = vld [vmem:[#allocation24] sm:$0xff] (!%p2505_p5)  }
 0x8c7   : > { %v1798_v48 = vadd.f32 -0.28449672, %v1796_v47  ;;  %v1797_v49 = vmul.f32 %v2915_v38, %v1795_v31  ;;  %v3494_v47 = vmov (!%p2505_p5), 0.0   ;;  %v2925_v31 = vld [vmem:[#allocation24 + $0x8] sm:$0xff] (!%p2505_p5)  }
 0x8c8   : > { %2675 = vmatprep.subr.bf16.mxu0 (!%p2505_p5), %v3494_v47 }
 0x8c9   : > { %v1800_v50 = vmul.f32 %v2913_v35, %v1798_v48  ;;  %v1799_v51 = vadd.f32 -0.28449672, %v1797_v49  ;;  %v2926_v48 = vld [vmem:[#allocation24 + $0x10] sm:$0xff] (!%p2505_p5)   ;;  %v2927_v49 = vld [vmem:[#allocation24 + $0x18] sm:$0xff] (!%p2505_p5)  }
 0x8cb   : > { %v1802_v52 = vadd.f32 0.2548296, %v1800_v50  ;;  %v1801_v53 = vmul.f32 %v2915_v38, %v1799_v51  ;;  %v2928_v50 = vld [vmem:[#allocation24 + $0x20] sm:$0xff] (!%p2505_p5)  }
 0x8cd   : > { %v1804_v54 = vmul.f32 %v2913_v35, %v1802_v52  ;;  %v1803_v56 = vadd.f32 0.2548296, %v1801_v53  ;;  %v2929_v52 = vld [vmem:[#allocation24 + $0x28] sm:$0xff] (!%p2505_p5)  }
 0x8cf   : > { %v1814_v57 = vmul.f32 %v2917_v55, %v1804_v54  ;;  %v1805_v58 = vmul.f32 %v2915_v38, %v1803_v56  ;;  %v2930_v55 = vld [vmem:[#allocation24 + $0x30] sm:$0xff] (!%p2505_p5)  }
 0x8d1   : > { %v1816_v60 = vsub.f32 1.0, %v1814_v57  ;;  %v1815_v61 = vmul.f32 %v2919_v59, %v1805_v58  ;;  %v2931_v58 = vld [vmem:[#allocation24 + $0x38] sm:$0xff] (!%p2505_p5)  }
 0x8d3   : > { %v1820_v62 = vsub.f32 0.0, %v1816_v60  ;;  %v1817_v63 = vsub.f32 1.0, %v1815_v61  ;;  %v2506_v61 = vld [vmem:[#allocation26] ss:$0 sm:$0xff] (!%p2505_p5) }
 0x8d5   : > { %v1822_v0 = vsel %vm1818_vm3, %v1816_v60, %v1820_v62  ;;  %v1821_v1 = vsub.f32 0.0, %v1817_v63 }
 0x8d6   : > { %v1824_v2 = vadd.f32 1.0, %v1822_v0 }
 0x8d7   : > { %v1823_v3 = vsel %vm1819_vm4, %v1817_v63, %v1821_v1 }
 0x8d8   : > { %v1825_v9 = vadd.f32 1.0, %v1823_v3  ;;  %v1826_v10 = vmul.f32 %v1824_v2, %v1776_v7 }
 0x8da   : > { %v1827_v11 = vmul.f32 %v1825_v9, %v1777_v8 }
 0x8dc   : > { %v1828_v12 = vpack.c.bf16 %v1827_v11, %v1826_v10 }
 0x8de   : > { %2672 = vmatmul.mubr.bf16.vlgmr.msra.gmra.mrb[8].mxu0 %v1828_v12 }
 0x8df   : > { %2676 = vmatpush3.bf16.msra.mxu0 (!%p2505_p5), %v2924_v46  ;;  %2691 = vmatprep.mubr.msk.bf16.mxu0 (!%p2505_p5), %vm3495_vm5, %v3494_v47 }
 0x8e0   : > { %2677 = vmatprep.subr.bf16.mxu0 (!%p2505_p5), %v3494_v47 }
 0x8e3   : > { %2678 = vmatpush3.bf16.msra.mxu0 (!%p2505_p5), %v2925_v31 }
 0x8e4   : > { %2679 = vmatprep.subr.bf16.mxu0 (!%p2505_p5), %v3494_v47 }
 0x8e7   : > { %2680 = vmatpush3.bf16.msra.mxu0 (!%p2505_p5), %v2926_v48 }
 0x8e8   : > { %2681 = vmatprep.subr.bf16.mxu0 (!%p2505_p5), %v3494_v47 }
 0x8eb   : > { %2682 = vmatpush3.bf16.msra.mxu0 (!%p2505_p5), %v2927_v49 }
 0x8ec   : > { %2683 = vmatprep.subr.bf16.mxu0 (!%p2505_p5), %v3494_v47 }
 0x8ef   : > { %2684 = vmatpush3.bf16.msra.mxu0 (!%p2505_p5), %v2928_v50 }
 0x8f0   : > { %2685 = vmatprep.subr.bf16.mxu0 (!%p2505_p5), %v3494_v47 }
 0x8f3   : > { %2686 = vmatpush3.bf16.msra.mxu0 (!%p2505_p5), %v2929_v52 }
 0x8f4   : > { %2687 = vmatprep.subr.bf16.mxu0 (!%p2505_p5), %v3494_v47 }
 0x8f7   : > { %2688 = vmatpush3.bf16.msra.mxu0 (!%p2505_p5), %v2930_v55 }
 0x8f8   : > { %2689 = vmatprep.subr.bf16.mxu0 (!%p2505_p5), %v3494_v47 }
 0x8fb   : > { %2690 = vmatpush3.bf16.msra.mxu0 (!%p2505_p5), %v2931_v58 }
 0x9b1   : > { %v1934_v14 = vpop.f32.mrb[8].mxu0 }
 0x9b2   : > { %v1935_v15 = vadd.f32 %v2494_v13, %v1934_v14  ;;  %v2673_v16 = vpop.f32.mrb[9].mxu0 }
 0x9b3   : > { %v1937_v17 = vpop.f32.mrb[10].mxu0 }
 0x9b4   : > { %v1938_v19 = vadd.f32 %v2494_v13, %v1937_v17  ;;  %v2674_v20 = vpop.f32.mrb[11].mxu0  ;;  %v1941_v21 = vadd.f32 %v1935_v15, %v4271_v4 }
 0x9b6   : > { %1945 = vadd.xlane.f32.xlu0 %v1941_v21  ;;  %v1942_v23 = vadd.f32 %v1938_v19, %v4273_v6 }
 0x9b8   : > { %1947 = vadd.xlane.f32.xlu1 %v1942_v23 }
 0xa43   : > { %v1946_v18 = vpop.xlane.xlu0 %1945 }
 0xa44   : > { %v1949_v22 = vmul.f32 0.03125, %v1946_v18 }
 0xa45   : > { %v1948_v24 = vpop.xlane.xlu1 %1947 }
 0xa46   : > { %v1951_v27 = vsub.f32 %v1941_v21, %v1949_v22  ;;  %v1950_v28 = vmul.f32 0.03125, %v1948_v24 }
 0xa48   : > { %v1952_v29 = vsub.f32 %v1942_v23, %v1950_v28  ;;  %v1953_v30 = vsel %vm934_vm2, %v1951_v27, 0.0 }
 0xa49   : > { %v1955_v32 = vmul.f32 %v1953_v30, %v1953_v30 }
 0xa4a   : > { %v1954_v33 = vsel %vm934_vm2, %v1952_v29, 0.0 }
 0xa4b   : > { %1957 = vadd.xlane.f32.xlu0 %v1955_v32  ;;  %v1956_v4 = vmul.f32 %v1954_v33, %v1954_v33 }
 0xa4d   : > { %1959 = vadd.xlane.f32.xlu1 %v1956_v4 }
 0xad8   : > { %v1958_v6 = vpop.xlane.xlu0 %1957 }
 0xad9   : > { %v1961_v5 = vmul.f32 0.03125, %v1958_v6 }
 0xada   : > { %v1960_v34 = vpop.xlane.xlu1 %1959 }
 0xadb   : > { %v1963_v35 = vadd.f32 1e-05, %v1961_v5  ;;  %v1962_v36 = vmul.f32 0.03125, %v1960_v34 }
 0xadd   : > { %2920 = vrsqrt.f32 %v1963_v35  ;;  %v1964_v37 = vadd.f32 1e-05, %v1962_v36 }
 0xadf   : > { %2922 = vrsqrt.f32 %v1964_v37 }
 0xae7   : > { %v2921_v38 = vpop.eup %2920 }
 0xae8   : > { %v1967_v41 = vmul.f32 %v2921_v38, %v1953_v30 }
 0xae9   : > { %v2923_v42 = vpop.eup %2922 }
 0xaea   : > { %v1975_v25 = vmul.f32 %v2503_v39, %v1967_v41  ;;  %v1968_v26 = vmul.f32 %v2923_v42, %v1954_v33  ;;  %1990 = sbr.rel (%p2505_p5) target bundleno = 3024 (0xbd0), region = 148 }
 0xaec   : > { %v1983_v43 = vadd.f32 %v2504_v40, %v1975_v25  ;;  %v1976_v44 = vmul.f32 %v2503_v39, %v1968_v26 }
 0xaee   : > { %1985 = vst [vmem:[#allocation2] sm:$0xff] %v1983_v43  ;;  %v1984_v45 = vadd.f32 %v2504_v40, %v1976_v44  ;;  %v1991_v53 = vpack.c.bf16 (!%p2505_p5), %v1983_v43, %v1983_v43 }
 0xaf0   : > { %1986 = vst [vmem:[#allocation2 + $0x8] sm:$0xff] %v1984_v45  ;;  %v1992_v51 = vpack.c.bf16 (!%p2505_p5), %v1984_v45, %v1984_v45  ;;  %v2018_v56 = vunpack.c.l.b16 (!%p2505_p5), %v1991_v53 }
 0xaf2   : > { %v2019_v54 = vunpack.c.l.b16 %v1992_v51 }
 0xaf4   : > { %v2020_v57 = vrot.slane %v2019_v54, 7 }
 0xaf6   : > { %v2022_v59 = vsel %vm2021_vm6, %v2020_v57, %v2018_v56 }
 0xaf7   : > { %v2023_v60 = vpack.c.b16 %v2022_v59, %v2022_v59 }
 0xaf9   : > { %2692 = vmatmul.mubr.bf16.vlgmr.msra.gmra.mrb[0].mxu0 %v2023_v60 }
 0xbcc   : > { %v2107_v62 = vpop.f32.mrb[0].mxu0 }
 0xbcd   : > { %v2108_v63 = vadd.f32 %v2506_v61, %v2107_v62  ;;  %v2693_v0 = vpop.f32.mrb[1].mxu0 }
 0xbce   : > { %v2110_v1 = vpop.f32.mrb[2].mxu0 }
 0xbcf   : > { %2113 = vst [vmem:[#allocation27] sm:$0x3] %v2108_v63  ;;  %v2694_v2 = vpop.f32.mrb[3].mxu0 }
 0xbd0 PF: > { %s4458_s10 = sld [smem:[#allocation39_spill]]  ;;  %s3496_s28 = smov [#allocation27]  }
 0xbd1   : > { %s2121_s25 = sshll.u32 %s3496_s28, 4  ;;  %s2122_s25 = int_to_ptr.vmem [resolvable:$true] %s2121_s25 }
 0xbd2   : > { %s3376_s19 = scalar_lea.vmem %s2122_s25, 32  ;;  %p3383_p3 = scmp.lt.s32.totalorder %s2122_s25, %s2122_s25 }
 0xbd3   : > { %p3377_p10 = scmp.ne.s32.totalorder %s2122_s25, %s3376_s19  ;;  %p3384_p12 = scmp.lt.s32.totalorder %s3376_s19, %s3376_s19 }
 0xbd5   : > { %p3385_p4 = por %p3384_p12, %p3383_p3 }
 0xbd6   : > { %p2795_p8 = scmp.eq.s32.totalorder %s4458_s10, 1 }
 0xbd8   : > { %p3378_p1 = pnand %p3377_p10, %p2795_p8 }
 0xbda   : > { %p3379_p9 = pneg %p3378_p1 }
 0xbdc   : > { %p3386_p11 = pnand %p3385_p4, %p3379_p9 }
 0xbde   : > { %3389 = shalt.err (!%p3386_p11)
}
 0xbdf   : > { %s4459_s6 = sld [smem:[#allocation52_spill]] }
 0xbe5   : > { %s3390_s18 = scalar_lea.hbm %s4459_s6, 32 }
 0xbe6   : > { %p3391_p0 = scmp.ne.s32.totalorder %s4459_s6, %s3390_s18  ;;  %p3396_p2 = scmp.lt.u32.totalorder %s3390_s18, %s4459_s6 }
 0xbe8   : > { %p3392_p13 = pnand %p3391_p0, %p2795_p8 }
 0xbea   : > { %p3393_p6 = pneg %p3392_p13 }
 0xbec   : > { %p3398_p7 = pnand %p3396_p2, %p3393_p6 }
 0xbee   : > { %3401 = shalt.err (!%p3398_p7)
}
 0xbef   : > { %2738 = dma.vmem_to_hbm [thread:$0]  (%p2795_p8), %s2122_s25, 32, %s4459_s6, [#allocation5]  }
 0xbf0   : > { %3451 = dma.done.wait (%p2795_p8), [#allocation5], 32  }
 0xbf1   : > { %3453 = vsyncadd (%p2795_p8), [#allocation5], 4294967264 }
 0xbf2 PF: > { %s4460_s21 = sld [smem:[#allocation40_spill]]  ;;  %s4461_s18 = sld [smem:[#allocation37_spill]] }
 0xbf3   : > { %s4462_s19 = sld [smem:[#allocation38_spill]]  ;;  %s4463_s20 = sld [smem:[#allocation41_spill]] }
 0xbf8   : > { %p43_p5 = scmp.ge.s32.totalorder %s4460_s21, 4  }
 0xbfa   :  { %45 = sbr.rel (!%p43_p5) target bundleno = 26 (0x1a), region = 269 }
 0xc01   :  { %2134 = vsyncpa [#allocation4], 1 }
 0xc02   :  { %2136 = vsyncpa [#allocation4 + $0x1], 1 }
 0xc03   :  { %2137 = vsyncpa [#allocation7], 1 }
 0xc04   :  { %2139 = vsyncpa [#allocation7 + $0x1], 1 }
 0xc05   :  { %2140 = vsyncpa [#allocation10], 1 }
 0xc06   :  { %2142 = vsyncpa [#allocation10 + $0x1], 1 }
 0xc07   :  { %2143 = vsyncpa [#allocation13], 1 }
 0xc08   :  { %2145 = vsyncpa [#allocation13 + $0x1], 1 }
 0xc09   :  { %2146 = vsyncpa [#allocation16], 1 }
 0xc0a   :  { %2148 = vsyncpa [#allocation16 + $0x1], 1 }
 0xc0b   :  { %2149 = vsyncpa [#allocation19], 1 }
 0xc0c   :  { %2151 = vsyncpa [#allocation19 + $0x1], 1 }
 0xc0d   :  { %2152 = vsyncpa [#allocation22], 1 }
 0xc0e   :  { %2154 = vsyncpa [#allocation22 + $0x1], 1 }
 0xc0f   :  { %2155 = vsyncpa [#allocation25], 1 }
 0xc10   :  { %2156 = vsyncpa [#allocation5], 1 }
 0xc11   :  { %2158 = vsyncpa [#allocation5 + $0x1], 1 }

</bundles_post_ra>
